<compile_context>
chip_gen: v6e
topology: v6e:2x2x1
jax: 0.10.0
libtpu: 0.0.40
codegen_flags: <defaults>
</compile_context>

<pallas_src>
import jax
import jax.numpy as jnp
from jax import lax
from jax.experimental import pallas as pl
from jax.experimental.pallas import tpu as pltpu


# ----------------------------------------------------------------------------
# Pallas kernel: grid over edge tiles, agg[N,64] accumulator in VMEM scratch
# ----------------------------------------------------------------------------
def node_model_kernel(row_ref, colT_ref, e_ref, x_ref, invc_ref,
                      w1x_ref, w1e_ref, b1_ref, w2_ref, b2_ref,
                      w3x_ref, w3a_ref, b3_ref, w4_ref, b4_ref,
                      out_ref, agg_ref):
    k = pl.program_id(0)

    @pl.when(k == 0)
    def _():
        agg_ref[...] = jnp.zeros_like(agg_ref)

    te = row_ref.shape[0]        # edge-tile size
    n_pad = x_ref.shape[0]       # padded node count

    # ---- gather x[row] : in-kernel f32 one-hot (exact) on the MXU.
    row_t = row_ref[...]                                               # [TE, 1] i32
    g_row = (row_t == lax.broadcasted_iota(jnp.int32, (te, n_pad), 1)
             ).astype(jnp.float32)                                     # [TE, N]
    src = jnp.dot(g_row, x_ref[...], preferred_element_type=jnp.float32)  # [TE, Fx]

    # ---- node_mlp_1 on cat([x[row], edge_attr]) : split-K matmuls (no concat)
    h1 = (jnp.dot(src, w1x_ref[...], preferred_element_type=jnp.float32)
          + jnp.dot(e_ref[...], w1e_ref[...], preferred_element_type=jnp.float32)
          + b1_ref[...])
    h1 = jnp.maximum(h1, 0.0)
    msg = jnp.dot(h1, w2_ref[...], preferred_element_type=jnp.float32) + b2_ref[...]

    # ---- scatter-add into the resident accumulator.
    # One-hot built pre-transposed [N, TE] -> plain MXU matmul, no relayout.
    # Padded edges carry col == n_pad -> match nothing -> contribute zero.
    col_t = colT_ref[...]                                              # [1, TE] i32
    g_colT = (col_t == lax.broadcasted_iota(jnp.int32, (n_pad, te), 0)
              ).astype(jnp.float32)                                    # [N, TE]
    agg_ref[...] += jnp.dot(g_colT, msg, preferred_element_type=jnp.float32)

    # ---- finalize: scatter_mean + node_mlp_2, once, at the last edge tile.
    @pl.when(k == pl.num_programs(0) - 1)
    def _():
        agg = agg_ref[...] * invc_ref[...]                             # mean
        x = x_ref[...]
        h2 = (jnp.dot(x, w3x_ref[...], preferred_element_type=jnp.float32)
              + jnp.dot(agg, w3a_ref[...], preferred_element_type=jnp.float32)
              + b3_ref[...])
        h2 = jnp.maximum(h2, 0.0)
        out_ref[...] = (jnp.dot(h2, w4_ref[...], preferred_element_type=jnp.float32)
                        + b4_ref[...])


# ----------------------------------------------------------------------------
# Wrapper
# ----------------------------------------------------------------------------
def node_model_forward(params, x, edge_index, edge_attr, u=None, batch=None,
                       *, edge_tile=128):
    # `u` and `batch` are accepted but unused, matching NodeModel.forward.
    del u, batch
    assert edge_tile % 128 == 0, "edge_tile must be a multiple of 128 (lane-dense)"

    N, F_x = x.shape
    E, F_e = edge_attr.shape
    out_dim = params["w4"].shape[1]

    # Padding: nodes -> multiple of 8 (sublanes), edges -> multiple of the edge
    # tile, output channels -> multiple of 128 (lane-dense stores).
    n_pad = ((N + 7) // 8) * 8
    e_pad = ((E + edge_tile - 1) // edge_tile) * edge_tile
    out_pad = ((out_dim + 127) // 128) * 128

    row = edge_index[0].astype(jnp.int32)
    col = edge_index[1].astype(jnp.int32)

    x_p = jnp.pad(x, ((0, n_pad - N), (0, 0)))
    e_p = jnp.pad(edge_attr, ((0, e_pad - E), (0, 0)))
    # Padded edges point at node n_pad (doesn't exist) -> no gather / no scatter.
    row_p = jnp.pad(row, (0, e_pad - E), constant_values=n_pad)[:, None]   # [E_pad, 1]
    colT_p = jnp.pad(col, (0, e_pad - E), constant_values=n_pad)[None, :]  # [1, E_pad]

    # O(E) count computation (scatter_mean denominator), done in plain XLA.
    counts = jax.ops.segment_sum(jnp.ones((E,), jnp.float32), col, num_segments=N)
    inv_c = jnp.pad(1.0 / jnp.maximum(counts, 1.0), (0, n_pad - N),
                    constant_values=1.0)[:, None]                          # [N_pad, 1]

    # Lane-dense output: pad the last Linear to out_pad columns, slice after.
    w4_p = jnp.pad(params["w4"], ((0, 0), (0, out_pad - out_dim)))
    b4_p = jnp.pad(params["b4"], ((0, 0), (0, out_pad - out_dim)))

    n_tiles = e_pad // edge_tile

    def const(shape):
        return pl.BlockSpec(shape, lambda k: (0, 0))

    grid_spec = pltpu.PrefetchScalarGridSpec(
        num_scalar_prefetch=0,
        grid=(n_tiles,),
        in_specs=[
            pl.BlockSpec((edge_tile, 1), lambda k: (k, 0)),      # row indices
            pl.BlockSpec((1, edge_tile), lambda k: (0, k)),      # col indices (transposed)
            pl.BlockSpec((edge_tile, F_e), lambda k: (k, 0)),    # edge_attr tile
            const((n_pad, F_x)),                                 # x (resident)
            const((n_pad, 1)),                                   # 1/counts (resident)
            const(params["w1x"].shape), const(params["w1e"].shape), const(params["b1"].shape),
            const(params["w2"].shape), const(params["b2"].shape),
            const(params["w3x"].shape), const(params["w3a"].shape), const(params["b3"].shape),
            const(w4_p.shape), const(b4_p.shape),
        ],
        out_specs=pl.BlockSpec((n_pad, out_pad), lambda k: (0, 0)),
        scratch_shapes=[pltpu.VMEM((n_pad, 64), jnp.float32)],   # agg accumulator
    )

    out_p = pl.pallas_call(
        node_model_kernel,
        out_shape=jax.ShapeDtypeStruct((n_pad, out_pad), jnp.float32),
        grid_spec=grid_spec,
        compiler_params=pltpu.CompilerParams(
            dimension_semantics=("arbitrary",)),
    )(row_p, colT_p, e_p, x_p, inv_c,
      params["w1x"], params["w1e"], params["b1"],
      params["w2"], params["b2"],
      params["w3x"], params["w3a"], params["b3"],
      w4_p, b4_p)

    return out_p[:N, :out_dim]


# ----------------------------------------------------------------------------
# Parameters (PyTorch-Linear-like init; concat weights stored pre-split)
# ----------------------------------------------------------------------------
def _make_linear(key, fan_in, fan_out):
    kw, kb = jax.random.split(key)
    bound = 1.0 / (float(fan_in) ** 0.5)
    w = jax.random.uniform(kw, (fan_in, fan_out), jnp.float32, -bound, bound)
    b = jax.random.uniform(kb, (1, fan_out), jnp.float32, -bound, bound)
    return w, b


def make_node_model_params(key, F_x=32, F_e=32, out_dim=64):
    ks = jax.random.split(key, 4)
    p = {}
    w1, p["b1"] = _make_linear(ks[0], F_x + F_e, 64)     # node_mlp_1[0]
    p["w1x"], p["w1e"] = w1[:F_x], w1[F_x:]
    p["w2"], p["b2"] = _make_linear(ks[1], 64, 64)       # node_mlp_1[2]
    w3, p["b3"] = _make_linear(ks[2], F_x + 64, 64)      # node_mlp_2[0]
    p["w3x"], p["w3a"] = w3[:F_x], w3[F_x:]
    p["w4"], p["b4"] = _make_linear(ks[3], 64, out_dim)  # node_mlp_2[2]
    return p


# ----------------------------------------------------------------------------
# Pure-JAX reference (mirrors the PyTorch forward) for a correctness check
# ----------------------------------------------------------------------------
def node_model_ref(params, x, edge_index, edge_attr):
    row, col = edge_index[0], edge_index[1]
    N = x.shape[0]
    w1 = jnp.concatenate([params["w1x"], params["w1e"]], axis=0)
    w3 = jnp.concatenate([params["w3x"], params["w3a"]], axis=0)
    out = jnp.concatenate([x[row], edge_attr], axis=1)
    out = jnp.maximum(out @ w1 + params["b1"], 0.0) @ params["w2"] + params["b2"]
    seg_sum = jax.ops.segment_sum(out, col, num_segments=N)
    cnt = jax.ops.segment_sum(jnp.ones((col.shape[0],), jnp.float32), col, num_segments=N)
    agg = seg_sum / jnp.maximum(cnt, 1.0)[:, None]
    out = jnp.concatenate([x, agg], axis=1)
    return jnp.maximum(out @ w3 + params["b3"], 0.0) @ params["w4"] + params["b4"]


# ----------------------------------------------------------------------------
# Main
# ----------------------------------------------------------------------------
if __name__ == "__main__":
    # Small but multi-tile sizes: 300 edges / edge_tile=128 -> 3 grid steps,
    # exercising accumulator init/accumulate/finalize and edge padding.
    N_NODES, N_EDGES = 64, 300
    F_X, F_E, OUT_DIM = 32, 32, 64       # NodeModel defaults

    key = jax.random.PRNGKey(0)
    kx, ke, kr, kc, kp = jax.random.split(key, 5)
    x = jax.random.normal(kx, (N_NODES, F_X), dtype=jnp.float32)
    edge_attr = jax.random.normal(ke, (N_EDGES, F_E), dtype=jnp.float32)
    row = jax.random.randint(kr, (N_EDGES,), 0, N_NODES, dtype=jnp.int32)
    col = jax.random.randint(kc, (N_EDGES,), 0, N_NODES, dtype=jnp.int32)
    edge_index = jnp.stack([row, col], axis=0)

    params = make_node_model_params(kp, F_x=F_X, F_e=F_E, out_dim=OUT_DIM)

    fwd = jax.jit(node_model_forward)
    out = jax.block_until_ready(fwd(params, x, edge_index, edge_attr))

    ref = node_model_ref(params, x, edge_index, edge_attr)

    assert out.shape == (N_NODES, OUT_DIM)
    assert bool(jnp.all(jnp.isfinite(out)))
    assert bool(jnp.allclose(out, ref, atol=2e-3, rtol=2e-3))
    print("KERNEL_OK")
</pallas_src>

<mosaic_0001>
module attributes {stable_mosaic.version = 11 : i64} {
  func.func @node_model_kernel(%arg0: i32, %arg1: memref<128x1xi32, #tpu.memory_space<vmem>>, %arg2: memref<1x128xi32, #tpu.memory_space<vmem>>, %arg3: memref<128x32xf32, #tpu.memory_space<vmem>>, %arg4: memref<64x32xf32, #tpu.memory_space<vmem>>, %arg5: memref<64x1xf32, #tpu.memory_space<vmem>>, %arg6: memref<32x64xf32, #tpu.memory_space<vmem>>, %arg7: memref<32x64xf32, #tpu.memory_space<vmem>>, %arg8: memref<1x64xf32, #tpu.memory_space<vmem>>, %arg9: memref<64x64xf32, #tpu.memory_space<vmem>>, %arg10: memref<1x64xf32, #tpu.memory_space<vmem>>, %arg11: memref<32x64xf32, #tpu.memory_space<vmem>>, %arg12: memref<64x64xf32, #tpu.memory_space<vmem>>, %arg13: memref<1x64xf32, #tpu.memory_space<vmem>>, %arg14: memref<64x128xf32, #tpu.memory_space<vmem>>, %arg15: memref<1x128xf32, #tpu.memory_space<vmem>>, %arg16: memref<64x128xf32, #tpu.memory_space<vmem>>, %arg17: memref<64x64xf32, #tpu.memory_space<vmem>>) attributes {dimension_semantics = [#tpu.dimension_semantics<arbitrary>], iteration_bounds = array<i64: 3>, scalar_prefetch = 0 : i64, scratch_operands = 1 : i64, tpu.core_type = #tpu.core_type<tc>, window_params = [{transform_indices = @transform_0, window_bounds = array<i64: 128, 1>}, {transform_indices = @transform_1, window_bounds = array<i64: 1, 128>}, {transform_indices = @transform_2, window_bounds = array<i64: 128, 32>}, {pipeline_mode = #tpu.pipeline_mode<synchronous>, transform_indices = @transform_3, window_bounds = array<i64: 64, 32>}, {pipeline_mode = #tpu.pipeline_mode<synchronous>, transform_indices = @transform_4, window_bounds = array<i64: 64, 1>}, {pipeline_mode = #tpu.pipeline_mode<synchronous>, transform_indices = @transform_5, window_bounds = array<i64: 32, 64>}, {pipeline_mode = #tpu.pipeline_mode<synchronous>, transform_indices = @transform_6, window_bounds = array<i64: 32, 64>}, {pipeline_mode = #tpu.pipeline_mode<synchronous>, transform_indices = @transform_7, window_bounds = array<i64: 1, 64>}, {pipeline_mode = #tpu.pipeline_mode<synchronous>, transform_indices = @transform_8, window_bounds = array<i64: 64, 64>}, {pipeline_mode = #tpu.pipeline_mode<synchronous>, transform_indices = @transform_9, window_bounds = array<i64: 1, 64>}, {pipeline_mode = #tpu.pipeline_mode<synchronous>, transform_indices = @transform_10, window_bounds = array<i64: 32, 64>}, {pipeline_mode = #tpu.pipeline_mode<synchronous>, transform_indices = @transform_11, window_bounds = array<i64: 64, 64>}, {pipeline_mode = #tpu.pipeline_mode<synchronous>, transform_indices = @transform_12, window_bounds = array<i64: 1, 64>}, {pipeline_mode = #tpu.pipeline_mode<synchronous>, transform_indices = @transform_13, window_bounds = array<i64: 64, 128>}, {pipeline_mode = #tpu.pipeline_mode<synchronous>, transform_indices = @transform_14, window_bounds = array<i64: 1, 128>}, {pipeline_mode = #tpu.pipeline_mode<synchronous>, transform_indices = @transform_15, window_bounds = array<i64: 64, 128>}]} {
    %c0_i32 = arith.constant 0 : i32
    %0 = arith.cmpi eq, %arg0, %c0_i32 : i32
    %1 = arith.extui %0 : i1 to i32
    %c0_i32_0 = arith.constant 0 : i32
    %2 = arith.cmpi ne, %1, %c0_i32_0 : i32
    scf.if %2 {
      %cst_28 = arith.constant 0.000000e+00 : f32
      %40 = vector.broadcast %cst_28 : f32 to vector<64x64xf32>
      %c0_29 = arith.constant 0 : index
      %c0_30 = arith.constant 0 : index
      %41 = vector.load %arg17[%c0_29, %c0_30] : memref<64x64xf32, #tpu.memory_space<vmem>>, vector<64x64xf32>
      tpu.vector_store %arg17[%c0_29, %c0_30], %40 {strides = array<i32>} : memref<64x64xf32, #tpu.memory_space<vmem>>, vector<64x64xf32>,
    } else {
    }
    %c0 = arith.constant 0 : index
    %c0_1 = arith.constant 0 : index
    %3 = vector.load %arg1[%c0, %c0_1] : memref<128x1xi32, #tpu.memory_space<vmem>>, vector<128x1xi32>
    %4 = tpu.iota {dimensions = array<i32: 1>} : vector<128x64xi32>
    %5 = vector.broadcast %3 : vector<128x1xi32> to vector<128x64xi32>
    %6 = arith.cmpi eq, %5, %4 : vector<128x64xi32>
    %7 = arith.extui %6 : vector<128x64xi1> to vector<128x64xi32>
    %8 = arith.sitofp %7 : vector<128x64xi32> to vector<128x64xf32>
    %c0_2 = arith.constant 0 : index
    %c0_3 = arith.constant 0 : index
    %9 = vector.load %arg4[%c0_2, %c0_3] : memref<64x32xf32, #tpu.memory_space<vmem>>, vector<64x32xf32>
    %cst = arith.constant dense<0.000000e+00> : vector<128x32xf32>
    %10 = tpu.matmul %8, %9, %cst {dimension_numbers = #tpu.dot_dimension_numbers<[1], [0], [0], [1], [0, 0, 1, 1], [], []>} : vector<128x64xf32>, vector<64x32xf32>, vector<128x32xf32> -> vector<128x32xf32>
    %c0_4 = arith.constant 0 : index
    %c0_5 = arith.constant 0 : index
    %11 = vector.load %arg6[%c0_4, %c0_5] : memref<32x64xf32, #tpu.memory_space<vmem>>, vector<32x64xf32>
    %cst_6 = arith.constant dense<0.000000e+00> : vector<128x64xf32>
    %12 = tpu.matmul %10, %11, %cst_6 {dimension_numbers = #tpu.dot_dimension_numbers<[1], [0], [0], [1], [0, 0, 1, 1], [], []>} : vector<128x32xf32>, vector<32x64xf32>, vector<128x64xf32> -> vector<128x64xf32>
    %c0_7 = arith.constant 0 : index
    %c0_8 = arith.constant 0 : index
    %13 = vector.load %arg3[%c0_7, %c0_8] : memref<128x32xf32, #tpu.memory_space<vmem>>, vector<128x32xf32>
    %c0_9 = arith.constant 0 : index
    %c0_10 = arith.constant 0 : index
    %14 = vector.load %arg7[%c0_9, %c0_10] : memref<32x64xf32, #tpu.memory_space<vmem>>, vector<32x64xf32>
    %cst_11 = arith.constant dense<0.000000e+00> : vector<128x64xf32>
    %15 = tpu.matmul %13, %14, %cst_11 {dimension_numbers = #tpu.dot_dimension_numbers<[1], [0], [0], [1], [0, 0, 1, 1], [], []>} : vector<128x32xf32>, vector<32x64xf32>, vector<128x64xf32> -> vector<128x64xf32>
    %16 = arith.addf %12, %15 : vector<128x64xf32>
    %c0_12 = arith.constant 0 : index
    %c0_13 = arith.constant 0 : index
    %17 = vector.load %arg8[%c0_12, %c0_13] : memref<1x64xf32, #tpu.memory_space<vmem>>, vector<1x64xf32>
    %18 = vector.broadcast %17 : vector<1x64xf32> to vector<128x64xf32>
    %19 = arith.addf %16, %18 : vector<128x64xf32>
    %cst_14 = arith.constant 0.000000e+00 : f32
    %20 = vector.broadcast %cst_14 : f32 to vector<128x64xf32>
    %21 = arith.maximumf %19, %20 : vector<128x64xf32>
    %c0_15 = arith.constant 0 : index
    %c0_16 = arith.constant 0 : index
    %22 = vector.load %arg9[%c0_15, %c0_16] : memref<64x64xf32, #tpu.memory_space<vmem>>, vector<64x64xf32>
    %cst_17 = arith.constant dense<0.000000e+00> : vector<128x64xf32>
    %23 = tpu.matmul %21, %22, %cst_17 {dimension_numbers = #tpu.dot_dimension_numbers<[1], [0], [0], [1], [0, 0, 1, 1], [], []>} : vector<128x64xf32>, vector<64x64xf32>, vector<128x64xf32> -> vector<128x64xf32>
    %c0_18 = arith.constant 0 : index
    %c0_19 = arith.constant 0 : index
    %24 = vector.load %arg10[%c0_18, %c0_19] : memref<1x64xf32, #tpu.memory_space<vmem>>, vector<1x64xf32>
    %25 = vector.broadcast %24 : vector<1x64xf32> to vector<128x64xf32>
    %26 = arith.addf %23, %25 : vector<128x64xf32>
    %c0_20 = arith.constant 0 : index
    %c0_21 = arith.constant 0 : index
    %27 = vector.load %arg2[%c0_20, %c0_21] : memref<1x128xi32, #tpu.memory_space<vmem>>, vector<1x128xi32>
    %28 = tpu.iota {dimensions = array<i32: 0>} : vector<64x128xi32>
    %29 = vector.broadcast %27 : vector<1x128xi32> to vector<64x128xi32>
    %30 = arith.cmpi eq, %29, %28 : vector<64x128xi32>
    %31 = arith.extui %30 : vector<64x128xi1> to vector<64x128xi32>
    %32 = arith.sitofp %31 : vector<64x128xi32> to vector<64x128xf32>
    %c0_22 = arith.constant 0 : index
    %c0_23 = arith.constant 0 : index
    %33 = vector.load %arg17[%c0_22, %c0_23] : memref<64x64xf32, #tpu.memory_space<vmem>>, vector<64x64xf32>
    %cst_24 = arith.constant dense<0.000000e+00> : vector<64x64xf32>
    %34 = tpu.matmul %32, %26, %cst_24 {dimension_numbers = #tpu.dot_dimension_numbers<[1], [0], [0], [1], [0, 0, 1, 1], [], []>} : vector<64x128xf32>, vector<128x64xf32>, vector<64x64xf32> -> vector<64x64xf32>
    %35 = arith.addf %33, %34 : vector<64x64xf32>
    %c0_25 = arith.constant 0 : index
    %c0_26 = arith.constant 0 : index
    %36 = vector.load %arg17[%c0_25, %c0_26] : memref<64x64xf32, #tpu.memory_space<vmem>>, vector<64x64xf32>
    tpu.vector_store %arg17[%c0_25, %c0_26], %35 {strides = array<i32>} : memref<64x64xf32, #tpu.memory_space<vmem>>, vector<64x64xf32>,
    %c2_i32 = arith.constant 2 : i32
    %37 = arith.cmpi eq, %arg0, %c2_i32 : i32
    %38 = arith.extui %37 : i1 to i32
    %c0_i32_27 = arith.constant 0 : i32
    %39 = arith.cmpi ne, %38, %c0_i32_27 : i32
    scf.if %39 {
      %c0_28 = arith.constant 0 : index
      %c0_29 = arith.constant 0 : index
      %40 = vector.load %arg17[%c0_28, %c0_29] : memref<64x64xf32, #tpu.memory_space<vmem>>, vector<64x64xf32>
      %c0_30 = arith.constant 0 : index
      %c0_31 = arith.constant 0 : index
      %41 = vector.load %arg5[%c0_30, %c0_31] : memref<64x1xf32, #tpu.memory_space<vmem>>, vector<64x1xf32>
      %42 = vector.broadcast %41 : vector<64x1xf32> to vector<64x64xf32>
      %43 = arith.mulf %40, %42 : vector<64x64xf32>
      %c0_32 = arith.constant 0 : index
      %c0_33 = arith.constant 0 : index
      %44 = vector.load %arg4[%c0_32, %c0_33] : memref<64x32xf32, #tpu.memory_space<vmem>>, vector<64x32xf32>
      %c0_34 = arith.constant 0 : index
      %c0_35 = arith.constant 0 : index
      %45 = vector.load %arg11[%c0_34, %c0_35] : memref<32x64xf32, #tpu.memory_space<vmem>>, vector<32x64xf32>
      %cst_36 = arith.constant dense<0.000000e+00> : vector<64x64xf32>
      %46 = tpu.matmul %44, %45, %cst_36 {dimension_numbers = #tpu.dot_dimension_numbers<[1], [0], [0], [1], [0, 0, 1, 1], [], []>} : vector<64x32xf32>, vector<32x64xf32>, vector<64x64xf32> -> vector<64x64xf32>
      %c0_37 = arith.constant 0 : index
      %c0_38 = arith.constant 0 : index
      %47 = vector.load %arg12[%c0_37, %c0_38] : memref<64x64xf32, #tpu.memory_space<vmem>>, vector<64x64xf32>
      %cst_39 = arith.constant dense<0.000000e+00> : vector<64x64xf32>
      %48 = tpu.matmul %43, %47, %cst_39 {dimension_numbers = #tpu.dot_dimension_numbers<[1], [0], [0], [1], [0, 0, 1, 1], [], []>} : vector<64x64xf32>, vector<64x64xf32>, vector<64x64xf32> -> vector<64x64xf32>
      %49 = arith.addf %46, %48 : vector<64x64xf32>
      %c0_40 = arith.constant 0 : index
      %c0_41 = arith.constant 0 : index
      %50 = vector.load %arg13[%c0_40, %c0_41] : memref<1x64xf32, #tpu.memory_space<vmem>>, vector<1x64xf32>
      %51 = vector.broadcast %50 : vector<1x64xf32> to vector<64x64xf32>
      %52 = arith.addf %49, %51 : vector<64x64xf32>
      %cst_42 = arith.constant 0.000000e+00 : f32
      %53 = vector.broadcast %cst_42 : f32 to vector<64x64xf32>
      %54 = arith.maximumf %52, %53 : vector<64x64xf32>
      %c0_43 = arith.constant 0 : index
      %c0_44 = arith.constant 0 : index
      %55 = vector.load %arg14[%c0_43, %c0_44] : memref<64x128xf32, #tpu.memory_space<vmem>>, vector<64x128xf32>
      %cst_45 = arith.constant dense<0.000000e+00> : vector<64x128xf32>
      %56 = tpu.matmul %54, %55, %cst_45 {dimension_numbers = #tpu.dot_dimension_numbers<[1], [0], [0], [1], [0, 0, 1, 1], [], []>} : vector<64x64xf32>, vector<64x128xf32>, vector<64x128xf32> -> vector<64x128xf32>
      %c0_46 = arith.constant 0 : index
      %c0_47 = arith.constant 0 : index
      %57 = vector.load %arg15[%c0_46, %c0_47] : memref<1x128xf32, #tpu.memory_space<vmem>>, vector<1x128xf32>
      %58 = vector.broadcast %57 : vector<1x128xf32> to vector<64x128xf32>
      %59 = arith.addf %56, %58 : vector<64x128xf32>
      %c0_48 = arith.constant 0 : index
      %c0_49 = arith.constant 0 : index
      %60 = vector.load %arg16[%c0_48, %c0_49] : memref<64x128xf32, #tpu.memory_space<vmem>>, vector<64x128xf32>
      tpu.vector_store %arg16[%c0_48, %c0_49], %59 {strides = array<i32>} : memref<64x128xf32, #tpu.memory_space<vmem>>, vector<64x128xf32>,
    } else {
    }
    return
  }
  func.func @transform_0(%arg0: i32) -> (i32, i32) {
    %c0_i32 = arith.constant 0 : i32
    %c0_i32_0 = arith.constant 0 : i32
    return %arg0, %c0_i32 : i32, i32
  }
  func.func @transform_1(%arg0: i32) -> (i32, i32) {
    %c0_i32 = arith.constant 0 : i32
    %c0_i32_0 = arith.constant 0 : i32
    return %c0_i32, %arg0 : i32, i32
  }
  func.func @transform_2(%arg0: i32) -> (i32, i32) {
    %c0_i32 = arith.constant 0 : i32
    %c0_i32_0 = arith.constant 0 : i32
    return %arg0, %c0_i32 : i32, i32
  }
  func.func @transform_3(%arg0: i32) -> (i32, i32) {
    %c0_i32 = arith.constant 0 : i32
    %c0_i32_0 = arith.constant 0 : i32
    %c0_i32_1 = arith.constant 0 : i32
    return %c0_i32, %c0_i32_0 : i32, i32
  }
  func.func @transform_4(%arg0: i32) -> (i32, i32) {
    %c0_i32 = arith.constant 0 : i32
    %c0_i32_0 = arith.constant 0 : i32
    %c0_i32_1 = arith.constant 0 : i32
    return %c0_i32, %c0_i32_0 : i32, i32
  }
  func.func @transform_5(%arg0: i32) -> (i32, i32) {
    %c0_i32 = arith.constant 0 : i32
    %c0_i32_0 = arith.constant 0 : i32
    %c0_i32_1 = arith.constant 0 : i32
    return %c0_i32, %c0_i32_0 : i32, i32
  }
  func.func @transform_6(%arg0: i32) -> (i32, i32) {
    %c0_i32 = arith.constant 0 : i32
    %c0_i32_0 = arith.constant 0 : i32
    %c0_i32_1 = arith.constant 0 : i32
    return %c0_i32, %c0_i32_0 : i32, i32
  }
  func.func @transform_7(%arg0: i32) -> (i32, i32) {
    %c0_i32 = arith.constant 0 : i32
    %c0_i32_0 = arith.constant 0 : i32
    %c0_i32_1 = arith.constant 0 : i32
    return %c0_i32, %c0_i32_0 : i32, i32
  }
  func.func @transform_8(%arg0: i32) -> (i32, i32) {
    %c0_i32 = arith.constant 0 : i32
    %c0_i32_0 = arith.constant 0 : i32
    %c0_i32_1 = arith.constant 0 : i32
    return %c0_i32, %c0_i32_0 : i32, i32
  }
  func.func @transform_9(%arg0: i32) -> (i32, i32) {
    %c0_i32 = arith.constant 0 : i32
    %c0_i32_0 = arith.constant 0 : i32
    %c0_i32_1 = arith.constant 0 : i32
    return %c0_i32, %c0_i32_0 : i32, i32
  }
  func.func @transform_10(%arg0: i32) -> (i32, i32) {
    %c0_i32 = arith.constant 0 : i32
    %c0_i32_0 = arith.constant 0 : i32
    %c0_i32_1 = arith.constant 0 : i32
    return %c0_i32, %c0_i32_0 : i32, i32
  }
  func.func @transform_11(%arg0: i32) -> (i32, i32) {
    %c0_i32 = arith.constant 0 : i32
    %c0_i32_0 = arith.constant 0 : i32
    %c0_i32_1 = arith.constant 0 : i32
    return %c0_i32, %c0_i32_0 : i32, i32
  }
  func.func @transform_12(%arg0: i32) -> (i32, i32) {
    %c0_i32 = arith.constant 0 : i32
    %c0_i32_0 = arith.constant 0 : i32
    %c0_i32_1 = arith.constant 0 : i32
    return %c0_i32, %c0_i32_0 : i32, i32
  }
  func.func @transform_13(%arg0: i32) -> (i32, i32) {
    %c0_i32 = arith.constant 0 : i32
    %c0_i32_0 = arith.constant 0 : i32
    %c0_i32_1 = arith.constant 0 : i32
    return %c0_i32, %c0_i32_0 : i32, i32
  }
  func.func @transform_14(%arg0: i32) -> (i32, i32) {
    %c0_i32 = arith.constant 0 : i32
    %c0_i32_0 = arith.constant 0 : i32
    %c0_i32_1 = arith.constant 0 : i32
    return %c0_i32, %c0_i32_0 : i32, i32
  }
  func.func @transform_15(%arg0: i32) -> (i32, i32) {
    %c0_i32 = arith.constant 0 : i32
    %c0_i32_0 = arith.constant 0 : i32
    %c0_i32_1 = arith.constant 0 : i32
    return %c0_i32, %c0_i32_0 : i32, i32
  }
}

</mosaic_0001>

<bundles_post_ra>
// kernel: node_model_forward.1
= control target key start
LH: loop header
LB: loop body
LE: loop exit
PB: predicated region body
PF: predicated region fallthrough
CT: control target
= control target key end

     0   :  { %20 = vsyncpa [#allocation4], 0  ;;  %s3020_s18 = smov 0   ;;  %s3525_s0 = inlined_call_operand.vmem [shape: s32[384,1], index: 0, kind: input, shape index: {}]   ;;  %s3526_s1 = inlined_call_operand.vmem [shape: s32[1,384], index: 1, kind: input, shape index: {}]   ;;  %s3527_s2 = inlined_call_operand.vmem [shape: f32[384,32], index: 2, kind: input, shape index: {}]   ;;  %s3528_s3 = inlined_call_operand.vmem [shape: f32[64,32], index: 3, kind: input, shape index: {}]   ;;  %s3529_s4 = inlined_call_operand.vmem [shape: f32[64,1], index: 4, kind: input, shape index: {}]   ;;  %s3530_s5 = inlined_call_operand.vmem [shape: f32[32,64], index: 5, kind: input, shape index: {}]   ;;  %s3531_s6 = inlined_call_operand.vmem [shape: f32[32,64], index: 6, kind: input, shape index: {}]   ;;  %s3532_s7 = inlined_call_operand.vmem [shape: f32[1,64], index: 7, kind: input, shape index: {}]   ;;  %s3533_s8 = inlined_call_operand.vmem [shape: f32[64,64], index: 8, kind: input, shape index: {}]   ;;  %s3534_s9 = inlined_call_operand.vmem [shape: f32[1,64], index: 9, kind: input, shape index: {}]   ;;  %s3535_s10 = inlined_call_operand.vmem [shape: f32[32,64], index: 10, kind: input, shape index: {}]   ;;  %s3536_s11 = inlined_call_operand.vmem [shape: f32[64,64], index: 11, kind: input, shape index: {}]   ;;  %s3537_s12 = inlined_call_operand.vmem [shape: f32[1,64], index: 12, kind: input, shape index: {}]   ;;  %s3538_s13 = inlined_call_operand.vmem [shape: f32[64,128], index: 13, kind: input, shape index: {}]   ;;  %s3539_s14 = inlined_call_operand.vmem [shape: f32[1,128], index: 14, kind: input, shape index: {}]   ;;  %s3540_s15 = inlined_call_operand.hbm [shape: f32[64,128], index: 15, kind: output, shape index: {}]  }
   0x1 LB: > { %s3026_s19 = sadd.s32 4294967295, %s2930_s18   ;;  %p2266_p0 = scmp.ge.s32.totalorder %s2930_s18, 1  ;;  %s2930_s18 = sphi %s3020_s18, %s26_s18  }
   0x2   : > { %p453_p1 = scmp.lt.s32.totalorder %s2930_s18, 4 }
   0x4   : > { %p454_p2 = pnand %p2266_p0, %p453_p1 }
   0x5   : > { %s2267_s20 = sshll.u32 (!%p454_p2), %s3026_s19, 4  ;;  %p510_p3 = scmp.lt.s32.totalorder (!%p454_p2), %s3026_s19, 2 }
   0x6   : > { %457 = sbr.rel (%p454_p2) target bundleno = 1573 (0x625), region = 80  ;;  %p505_p4 = scmp.lt.s32.totalorder (!%p454_p2), %s2267_s20, 47 }
   0x7   : > { %p2271_p5 = scmp.ne.s32.totalorder (!%p454_p2), %s3026_s19, 0 }
   0xb   : > { %s3033_s21 = scalar_select %p510_p3, %s3026_s19, 2 }
   0xc   : > { %s3542_s20 = smov (!%p505_p4, %s2267_s20), 47  ;;  %522 = sbr.rel (%p2271_p5) target bundleno = 22 (0x16), region = 84 }
   0xd   : > { %s512_s24 = scalar_lea.vmem %s3526_s1, %s3033_s21  ;;  %s2268_s25 = sshll.u32 %s3542_s20, 3 }
   0xe   : > { %s3042_s28 = scalar_lea.vmem %s3525_s0, %s2268_s25  ;;  %s3047_s16 = scalar_lea.vmem %s3527_s2, %s2268_s25 }
  0x11   : > { %vm523_vm0 = vcmask 523264   ;;  %v2932_v0 = vmov 0.0  }
  0x12   : > { %524 = vst.msk [vmem:[#allocation2] sm:$0xff] %vm523_vm0, %v2932_v0  ;;  %525 = vst.msk [vmem:[#allocation2 + $0x8] sm:$0xff] %vm523_vm0, %v2932_v0 }
  0x13   : > { %526 = vst.msk [vmem:[#allocation2 + $0x10] sm:$0xff] %vm523_vm0, %v2932_v0  ;;  %527 = vst.msk [vmem:[#allocation2 + $0x18] sm:$0xff] %vm523_vm0, %v2932_v0 }
  0x14   : > { %528 = vst.msk [vmem:[#allocation2 + $0x20] sm:$0xff] %vm523_vm0, %v2932_v0  ;;  %529 = vst.msk [vmem:[#allocation2 + $0x28] sm:$0xff] %vm523_vm0, %v2932_v0 }
  0x15   : > { %530 = vst.msk [vmem:[#allocation2 + $0x30] sm:$0xff] %vm523_vm0, %v2932_v0  ;;  %531 = vst.msk [vmem:[#allocation2 + $0x38] sm:$0xff] %vm523_vm0, %v2932_v0 }
  0x16 PF: > { %v534_v1 = vld [vmem:[%s3042_s28 + $0x10] sm:$0xff]  ;;  %v532_v2 = vld [vmem:[%s3042_s28] sm:$0xff]  ;;  %v2933_v3 = vmov 0   ;;  %v535_v4 = vld [vmem:[%s3042_s28 + $0x18] sm:$0xff]  ;;  %vm872_vm1 = vcmask 261120   ;;  %v548_v50 = vlaneseq  ;;  %vm654_vm2 = vcmask 523264  }
  0x17   : > { %2893 = vset.pattern.permute.xlu1 %v2933_v3  ;;  %2892 = vset.pattern.permute.xlu0 %v2933_v3  ;;  %v533_v5 = vld [vmem:[%s3042_s28 + $0x8] sm:$0xff]  ;;  %v653_v6 = vld [vmem:[%s3528_s3 + $0x38] sm:$0xff]  ;;  %v652_v7 = vld [vmem:[%s3528_s3 + $0x30] sm:$0xff]  ;;  %v2934_v54 = vmov 0.0   ;;  %p2371_p6 = scmp.ne.s32.totalorder %s3026_s19, 2 }
  0x18   : > { %557 = vperm.xlu1 %2893, %v534_v1   ;;  %551 = vperm.xlu0 %2892, %v532_v2   ;;  %v537_v8 = vld [vmem:[%s3042_s28 + $0x28] sm:$0xff]  ;;  %v536_v9 = vld [vmem:[%s3042_s28 + $0x20] sm:$0xff]  ;;  %v539_v11 = vld [vmem:[%s3042_s28 + $0x38] sm:$0xff]  ;;  %v3147_v51 = vand.u32 127, %v548_v50 }
  0x19   : > { %2558 = vmatprep.subr.mxu0 %v653_v6  ;;  %v651_v10 = vld [vmem:[%s3528_s3 + $0x28] sm:$0xff]  ;;  %v538_v12 = vld [vmem:[%s3042_s28 + $0x30] sm:$0xff]  ;;  %v650_v13 = vld [vmem:[%s3528_s3 + $0x20] sm:$0xff] }
  0x1a   : > { %2559 = vmatpush3.msra.mxu0 %v653_v6  ;;  %v649_v14 = vld [vmem:[%s3528_s3 + $0x18] sm:$0xff]  ;;  %v541_v15 = vld [vmem:[%s3042_s28 + $0x48] sm:$0xff]  ;;  %v540_v16 = vld [vmem:[%s3042_s28 + $0x40] sm:$0xff] }
  0x1b   : > { %2560 = vmatprep.subr.mxu0 %v652_v7  ;;  %v648_v17 = vld [vmem:[%s3528_s3 + $0x10] sm:$0xff]  ;;  %v543_v18 = vld [vmem:[%s3042_s28 + $0x58] sm:$0xff]  ;;  %v647_v20 = vld [vmem:[%s3528_s3 + $0x8] sm:$0xff] }
  0x1c   : > { %560 = vperm.xlu1 %2893, %v535_v4   ;;  %554 = vperm.xlu0 %2892, %v533_v5   ;;  %v542_v19 = vld [vmem:[%s3042_s28 + $0x50] sm:$0xff]  ;;  %v646_v21 = vld [vmem:[%s3528_s3] sm:$0xff]  ;;  %v545_v22 = vld [vmem:[%s3042_s28 + $0x68] sm:$0xff] }
  0x1d   : > { %2561 = vmatpush3.msra.mxu0 %v652_v7  ;;  %v544_v23 = vld [vmem:[%s3042_s28 + $0x60] sm:$0xff]  ;;  %v547_v24 = vld [vmem:[%s3042_s28 + $0x78] sm:$0xff]  ;;  %v546_v25 = vld [vmem:[%s3042_s28 + $0x70] sm:$0xff] }
  0x1e   : > { %2562 = vmatprep.subr.mxu0 %v651_v10  ;;  %v871_v26 = vld [vmem:[%s3531_s6 + $0x18] sm:$0xff]  ;;  %v870_v27 = vld [vmem:[%s3531_s6 + $0x10] sm:$0xff]  ;;  %v852_v28 = vld [vmem:[%s3047_s16] sm:$0xff] }
  0x1f   : > { %2563 = vmatpush3.msra.mxu0 %v651_v10  ;;  %2598 = vmatprep.subr.mxu1 %v871_v26  ;;  %v869_v29 = vld [vmem:[%s3531_s6 + $0x8] sm:$0xff]  ;;  %v868_v30 = vld [vmem:[%s3531_s6] sm:$0xff]  ;;  %v851_v32 = vld [vmem:[%s3530_s5 + $0x18] sm:$0xff] }
  0x20   : > { %566 = vperm.xlu1 %2893, %v537_v8   ;;  %563 = vperm.xlu0 %2892, %v536_v9   ;;  %v853_v31 = vld [vmem:[%s3047_s16 + $0x8] sm:$0xff]  ;;  %v854_v33 = vld [vmem:[%s3047_s16 + $0x10] sm:$0xff]  ;;  %v855_v35 = vld [vmem:[%s3047_s16 + $0x18] sm:$0xff] }
  0x21   : > { %2564 = vmatprep.subr.mxu0 %v650_v13  ;;  %2599 = vmatpush3.msra.mxu1 %v871_v26  ;;  %v850_v34 = vld [vmem:[%s3530_s5 + $0x10] sm:$0xff]  ;;  %v849_v36 = vld [vmem:[%s3530_s5 + $0x8] sm:$0xff]  ;;  %v856_v37 = vld [vmem:[%s3047_s16 + $0x20] sm:$0xff] }
  0x22   : > { %2565 = vmatpush3.msra.mxu0 %v650_v13  ;;  %2606 = vmatprep.mubr.msk.f32.mxu1 %vm872_vm1, %v852_v28  ;;  %v848_v38 = vld [vmem:[%s3530_s5] sm:$0xff]  ;;  %v857_v39 = vld [vmem:[%s3047_s16 + $0x28] sm:$0xff]  ;;  %v858_v40 = vld [vmem:[%s3047_s16 + $0x30] sm:$0xff] }
  0x23   : > { %2566 = vmatprep.subr.mxu0 %v649_v14  ;;  %2600 = vmatprep.subr.mxu1 %v870_v27  ;;  %v859_v41 = vld [vmem:[%s3047_s16 + $0x38] sm:$0xff]  ;;  %v860_v42 = vld [vmem:[%s3047_s16 + $0x40] sm:$0xff]  ;;  %v861_v43 = vld [vmem:[%s3047_s16 + $0x48] sm:$0xff] }
  0x24   : > { %572 = vperm.xlu1 %2893, %v539_v11   ;;  %569 = vperm.xlu0 %2892, %v538_v12   ;;  %v862_v44 = vld [vmem:[%s3047_s16 + $0x50] sm:$0xff]  ;;  %v863_v45 = vld [vmem:[%s3047_s16 + $0x58] sm:$0xff]  ;;  %v864_v46 = vld [vmem:[%s3047_s16 + $0x60] sm:$0xff] }
  0x25   : > { %2567 = vmatpush3.msra.mxu0 %v649_v14  ;;  %2601 = vmatpush3.msra.mxu1 %v870_v27  ;;  %v865_v47 = vld [vmem:[%s3047_s16 + $0x68] sm:$0xff]  ;;  %v866_v48 = vld [vmem:[%s3047_s16 + $0x70] sm:$0xff]  ;;  %v867_v49 = vld [vmem:[%s3047_s16 + $0x78] sm:$0xff] }
  0x26   : > { %2568 = vmatprep.subr.mxu0 %v648_v17  ;;  %2602 = vmatprep.subr.mxu1 %v869_v29  ;;  %v1300_v26 = vld [vmem:[%s3533_s8 + $0x10] sm:$0xff] }
  0x27   : > { %2569 = vmatpush3.msra.mxu0 %v648_v17  ;;  %2603 = vmatpush3.msra.mxu1 %v869_v29 }
  0x28   : > { %578 = vperm.xlu1 %2893, %v541_v15   ;;  %575 = vperm.xlu0 %2892, %v540_v16  }
  0x29   : > { %2570 = vmatprep.subr.mxu0 %v647_v20  ;;  %2604 = vmatprep.subr.mxu1 %v868_v30 }
  0x2a   : > { %2571 = vmatpush3.msra.mxu0 %v647_v20  ;;  %2605 = vmatpush3.msra.mxu1 %v868_v30 }
  0x2b   : > { %2572 = vmatprep.subr.mxu0 %v646_v21  ;;  %2607 = vmatmul.mubr.msk.f32.vlgmr.msra.gmra.mxu1 %vm872_vm1, %v853_v31 }
  0x2c   : > { %584 = vperm.xlu1 %2893, %v543_v18   ;;  %581 = vperm.xlu0 %2892, %v542_v19  }
  0x2d   : > { %2573 = vmatpush3.msra.mxu0 %v646_v21  ;;  %2630 = vmatprep.subr.mxu1 %v851_v32  ;;  %v1305_v21 = vld [vmem:[%s3533_s8 + $0x38] sm:$0xff] }
  0x2e   : > { %2609 = vmatprep.mubr.msk.f32.mxu1 %vm872_vm1, %v854_v33  ;;  %2631 = vmatpush3.msra.mxu1 %v851_v32 }
  0x2f   : > { %2632 = vmatprep.subr.mxu1 %v850_v34  ;;  %2610 = vmatmul.mubr.msk.f32.gmra.mxu1 %vm872_vm1, %v855_v35 }
  0x30   : > { %590 = vperm.xlu1 %2893, %v545_v22   ;;  %587 = vperm.xlu0 %2892, %v544_v23   ;;  %v1304_v22 = vld [vmem:[%s3533_s8 + $0x30] sm:$0xff]  ;;  %v1303_v23 = vld [vmem:[%s3533_s8 + $0x28] sm:$0xff] }
  0x31   : > { %2633 = vmatpush3.msra.mxu1 %v850_v34  ;;  %2612 = vmatprep.mubr.msk.f32.mxu1 %vm872_vm1, %v856_v37 }
  0x32   : > { %2634 = vmatprep.subr.mxu1 %v849_v36  ;;  %2662 = vmatprep.subr.mxu0 %v1305_v21 }
  0x33   : > { %2635 = vmatpush3.msra.mxu1 %v849_v36 }
  0x34   : > { %596 = vperm.xlu1 %2893, %v547_v24   ;;  %593 = vperm.xlu0 %2892, %v546_v25   ;;  %v1302_v24 = vld [vmem:[%s3533_s8 + $0x20] sm:$0xff]  ;;  %v1301_v25 = vld [vmem:[%s3533_s8 + $0x18] sm:$0xff] }
  0x35   : > { %2636 = vmatprep.subr.mxu1 %v848_v38  ;;  %2613 = vmatmul.mubr.msk.f32.gmra.mxu1 %vm872_vm1, %v857_v39 }
  0x36   : > { %2637 = vmatpush3.msra.mxu1 %v848_v38  ;;  %2615 = vmatprep.mubr.msk.f32.mxu1 %vm872_vm1, %v858_v40 }
  0x39   : > { %2616 = vmatmul.mubr.msk.f32.gmra.mxu1 %vm872_vm1, %v859_v41 }
  0x3a   : > { %2618 = vmatprep.mubr.msk.f32.mxu1 %vm872_vm1, %v860_v42 }
  0x3d   : > { %2619 = vmatmul.mubr.msk.f32.gmra.mxu1 %vm872_vm1, %v861_v43  ;;  %v1299_v43 = vld [vmem:[%s3533_s8 + $0x8] sm:$0xff] }
  0x3e   : > { %2621 = vmatprep.mubr.msk.f32.mxu1 %vm872_vm1, %v862_v44  ;;  %v1298_v44 = vld [vmem:[%s3533_s8] sm:$0xff] }
  0x41   : > { %2622 = vmatmul.mubr.msk.f32.gmra.mxu1 %vm872_vm1, %v863_v45 }
  0x42   : > { %2624 = vmatprep.mubr.msk.f32.mxu1 %vm872_vm1, %v864_v46 }
  0x45   : > { %2625 = vmatmul.mubr.msk.f32.gmra.mxu1 %vm872_vm1, %v865_v47 }
  0x46   : > { %2627 = vmatprep.mubr.msk.f32.mxu1 %vm872_vm1, %v866_v48 }
  0x49   : > { %2628 = vmatmul.mubr.msk.f32.gmra.mxu1 %vm872_vm1, %v867_v49 }
  0x93   : > { %v558_v52 = vpop.permute.xlu1 %557  ;;  %v552_v53 = vpop.permute.xlu0 %551 }
  0x94   : > { %vm598_vm3 = vcmp.eq.s32.totalorder %v552_v53, %v3147_v51  ;;  %vm600_vm4 = vcmp.eq.s32.totalorder %v558_v52, %v3147_v51 }
  0x95   : > { %v2272_v55 = vsel %vm598_vm3, 1.0, %v2934_v54  ;;  %v2274_v58 = vsel %vm600_vm4, 1.0, %v2934_v54 }
  0x96   : > { %2574 = vmatprep.mubr.msk.f32.mxu0 %vm654_vm2, %v2272_v55 }
  0x97   : > { %v561_v56 = vpop.permute.xlu1 %560  ;;  %v555_v57 = vpop.permute.xlu0 %554 }
  0x98   : > { %vm599_vm5 = vcmp.eq.s32.totalorder %v555_v57, %v3147_v51  ;;  %vm601_vm6 = vcmp.eq.s32.totalorder %v561_v56, %v3147_v51 }
  0x99   : > { %v2273_v59 = vsel %vm599_vm5, 1.0, %v2934_v54  ;;  %v2275_v62 = vsel %vm601_vm6, 1.0, %v2934_v54 }
  0x9a   : > { %2575 = vmatmul.mubr.msk.f32.vlgmr.msra.gmra.mxu0 %vm654_vm2, %v2273_v59 }
  0x9b   : > { %v567_v60 = vpop.permute.xlu1 %566  ;;  %2577 = vmatprep.mubr.msk.f32.mxu0 %vm654_vm2, %v2274_v58  ;;  %v564_v61 = vpop.permute.xlu0 %563  ;;  %2663 = vmatpush3.msra.mxu0 %v1305_v21 }
  0x9c   : > { %vm602_vm7 = vcmp.eq.s32.totalorder %v564_v61, %v3147_v51  ;;  %vm603_vm8 = vcmp.eq.s32.totalorder %v567_v60, %v3147_v51  ;;  %2664 = vmatprep.subr.mxu0 %v1304_v22 }
  0x9d   : > { %v2276_v63 = vsel %vm602_vm7, 1.0, %v2934_v54  ;;  %v2277_v2 = vsel %vm603_vm8, 1.0, %v2934_v54  ;;  %2665 = vmatpush3.msra.mxu0 %v1304_v22 }
  0x9e   : > { %2578 = vmatmul.mubr.msk.f32.gmra.mxu0 %vm654_vm2, %v2275_v62  ;;  %2666 = vmatprep.subr.mxu0 %v1303_v23 }
  0x9f   : > { %v573_v0 = vpop.permute.xlu1 %572  ;;  %2580 = vmatprep.mubr.msk.f32.mxu0 %vm654_vm2, %v2276_v63  ;;  %v570_v1 = vpop.permute.xlu0 %569  ;;  %2667 = vmatpush3.msra.mxu0 %v1303_v23 }
  0xa0   : > { %vm604_vm9 = vcmp.eq.s32.totalorder %v570_v1, %v3147_v51  ;;  %vm605_vm10 = vcmp.eq.s32.totalorder %v573_v0, %v3147_v51  ;;  %2668 = vmatprep.subr.mxu0 %v1302_v24  ;;  %v3230_v0 = vld [vmem:[%s3532_s7] ss:$0 sm:$0xff] }
  0xa1   : > { %v2278_v3 = vsel %vm604_vm9, 1.0, %v2934_v54  ;;  %v2279_v6 = vsel %vm605_vm10, 1.0, %v2934_v54  ;;  %2669 = vmatpush3.msra.mxu0 %v1302_v24 }
  0xa2   : > { %2581 = vmatmul.mubr.msk.f32.gmra.mxu0 %vm654_vm2, %v2277_v2  ;;  %2670 = vmatprep.subr.mxu0 %v1301_v25 }
  0xa3   : > { %v579_v4 = vpop.permute.xlu1 %578  ;;  %2583 = vmatprep.mubr.msk.f32.mxu0 %vm654_vm2, %v2278_v3  ;;  %v576_v5 = vpop.permute.xlu0 %575  ;;  %2671 = vmatpush3.msra.mxu0 %v1301_v25 }
  0xa4   : > { %vm606_vm11 = vcmp.eq.s32.totalorder %v576_v5, %v3147_v51  ;;  %vm607_vm12 = vcmp.eq.s32.totalorder %v579_v4, %v3147_v51  ;;  %2672 = vmatprep.subr.mxu0 %v1300_v26 }
  0xa5   : > { %v2280_v7 = vsel %vm606_vm11, 1.0, %v2934_v54  ;;  %v2281_v10 = vsel %vm607_vm12, 1.0, %v2934_v54  ;;  %2673 = vmatpush3.msra.mxu0 %v1300_v26 }
  0xa6   : > { %2584 = vmatmul.mubr.msk.f32.gmra.mxu0 %vm654_vm2, %v2279_v6  ;;  %2674 = vmatprep.subr.mxu0 %v1299_v43 }
  0xa7   : > { %v585_v8 = vpop.permute.xlu1 %584  ;;  %2586 = vmatprep.mubr.msk.f32.mxu0 %vm654_vm2, %v2280_v7  ;;  %v582_v9 = vpop.permute.xlu0 %581  ;;  %2675 = vmatpush3.msra.mxu0 %v1299_v43 }
  0xa8   : > { %vm608_vm13 = vcmp.eq.s32.totalorder %v582_v9, %v3147_v51  ;;  %vm609_vm14 = vcmp.eq.s32.totalorder %v585_v8, %v3147_v51  ;;  %2676 = vmatprep.subr.mxu0 %v1298_v44 }
  0xa9   : > { %v2282_v11 = vsel %vm608_vm13, 1.0, %v2934_v54  ;;  %v2283_v14 = vsel %vm609_vm14, 1.0, %v2934_v54  ;;  %2677 = vmatpush3.msra.mxu0 %v1298_v44 }
  0xaa   : > { %2587 = vmatmul.mubr.msk.f32.gmra.mxu0 %vm654_vm2, %v2281_v10 }
  0xab   : > { %v591_v12 = vpop.permute.xlu1 %590  ;;  %2589 = vmatprep.mubr.msk.f32.mxu0 %vm654_vm2, %v2282_v11  ;;  %v588_v13 = vpop.permute.xlu0 %587 }
  0xac   : > { %vm610_vm15 = vcmp.eq.s32.totalorder %v588_v13, %v3147_v51  ;;  %vm611_vm0 = vcmp.eq.s32.totalorder %v591_v12, %v3147_v51 }
  0xad   : > { %v2284_v15 = vsel %vm610_vm15, 1.0, %v2934_v54  ;;  %v2285_v18 = vsel %vm611_vm0, 1.0, %v2934_v54 }
  0xae   : > { %2590 = vmatmul.mubr.msk.f32.gmra.mxu0 %vm654_vm2, %v2283_v14 }
  0xaf   : > { %v597_v16 = vpop.permute.xlu1 %596  ;;  %2592 = vmatprep.mubr.msk.f32.mxu0 %vm654_vm2, %v2284_v15  ;;  %v594_v17 = vpop.permute.xlu0 %593 }
  0xb0   : > { %vm612_vm3 = vcmp.eq.s32.totalorder %v594_v17, %v3147_v51  ;;  %vm613_vm4 = vcmp.eq.s32.totalorder %v597_v16, %v3147_v51 }
  0xb1   : > { %v2286_v19 = vsel %vm612_vm3, 1.0, %v2934_v54  ;;  %v2287_v20 = vsel %vm613_vm4, 1.0, %v2934_v54 }
  0xb2   : > { %2593 = vmatmul.mubr.msk.f32.gmra.mxu0 %vm654_vm2, %v2285_v18 }
  0xb3   : > { %2595 = vmatprep.mubr.msk.f32.mxu0 %vm654_vm2, %v2286_v19 }
  0xb6   : > { %2596 = vmatmul.mubr.msk.f32.gmra.mxu0 %vm654_vm2, %v2287_v20 }
  0xeb   : > { %v2608_v45 = vpop.f32.mrf.mxu1 }
  0xed   : > { %v987_v46 = vpop.f32.mrf.mxu1 }
  0xef   : > { %v2611_v47 = vpop.f32.mrf.mxu1 }
  0xf1   : > { %v997_v48 = vpop.f32.mrf.mxu1 }
  0xf5   : > { %v2614_v49 = vpop.f32.mrf.mxu1 }
  0xf7   : > { %v1007_v51 = vpop.f32.mrf.mxu1 }
  0xf9   : > { %v2617_v52 = vpop.f32.mrf.mxu1 }
  0xfb   : > { %v1017_v53 = vpop.f32.mrf.mxu1 }
  0xfd   : > { %v2620_v54 = vpop.f32.mrf.mxu1 }
  0xff   : > { %v1027_v55 = vpop.f32.mrf.mxu1 }
 0x101   : > { %v2623_v56 = vpop.f32.mrf.mxu1 }
 0x103   : > { %v1037_v57 = vpop.f32.mrf.mxu1 }
 0x105   : > { %v2626_v58 = vpop.f32.mrf.mxu1 }
 0x107   : > { %v3221_v59 = vpop.f32.mrf.mxu1 }
 0x109   : > { %v3223_v60 = vpop.f32.mrf.mxu1 }
 0x10b   : > { %v3225_v61 = vpop.f32.mrf.mxu1 }
 0x15a   : > { %v2576_v27 = vpop.f32.mrf.mxu0 }
 0x15c   : > { %v769_v28 = vpop.f32.mrf.mxu0 }
 0x15d   : > { %2638 = vmatprep.mubr.msk.f32.mxu1 %vm872_vm1, %v769_v28 }
 0x15e   : > { %v2579_v29 = vpop.f32.mrf.mxu0  ;;  %2639 = vmatmul.mubr.msk.f32.vlgmr.msra.gmra.mxu1 %vm872_vm1, %v2576_v27 }
 0x160   : > { %v779_v30 = vpop.f32.mrf.mxu0 }
 0x161   : > { %2641 = vmatprep.mubr.msk.f32.mxu1 %vm872_vm1, %v779_v30 }
 0x162   : > { %v2582_v31 = vpop.f32.mrf.mxu0  ;;  %2642 = vmatmul.mubr.msk.f32.gmra.mxu1 %vm872_vm1, %v2579_v29 }
 0x164   : > { %v789_v32 = vpop.f32.mrf.mxu0 }
 0x165   : > { %2644 = vmatprep.mubr.msk.f32.mxu1 %vm872_vm1, %v789_v32 }
 0x166   : > { %v2585_v33 = vpop.f32.mrf.mxu0  ;;  %2645 = vmatmul.mubr.msk.f32.gmra.mxu1 %vm872_vm1, %v2582_v31 }
 0x168   : > { %v799_v34 = vpop.f32.mrf.mxu0 }
 0x169   : > { %2647 = vmatprep.mubr.msk.f32.mxu1 %vm872_vm1, %v799_v34 }
 0x16a   : > { %v2588_v35 = vpop.f32.mrf.mxu0  ;;  %2648 = vmatmul.mubr.msk.f32.gmra.mxu1 %vm872_vm1, %v2585_v33 }
 0x16c   : > { %v809_v36 = vpop.f32.mrf.mxu0 }
 0x16d   : > { %2650 = vmatprep.mubr.msk.f32.mxu1 %vm872_vm1, %v809_v36 }
 0x16e   : > { %v2591_v37 = vpop.f32.mrf.mxu0  ;;  %2651 = vmatmul.mubr.msk.f32.gmra.mxu1 %vm872_vm1, %v2588_v35 }
 0x170   : > { %v819_v38 = vpop.f32.mrf.mxu0 }
 0x171   : > { %2653 = vmatprep.mubr.msk.f32.mxu1 %vm872_vm1, %v819_v38 }
 0x172   : > { %v2594_v39 = vpop.f32.mrf.mxu0  ;;  %2654 = vmatmul.mubr.msk.f32.gmra.mxu1 %vm872_vm1, %v2591_v37 }
 0x174   : > { %v829_v40 = vpop.f32.mrf.mxu0 }
 0x175   : > { %2656 = vmatprep.mubr.msk.f32.mxu1 %vm872_vm1, %v829_v40 }
 0x176   : > { %v2597_v41 = vpop.f32.mrf.mxu0  ;;  %2657 = vmatmul.mubr.msk.f32.gmra.mxu1 %vm872_vm1, %v2594_v39 }
 0x178   : > { %v839_v42 = vpop.f32.mrf.mxu0 }
 0x179   : > { %2659 = vmatprep.mubr.msk.f32.mxu1 %vm872_vm1, %v839_v42 }
 0x17a   : > { %2660 = vmatmul.mubr.msk.f32.gmra.mxu1 %vm872_vm1, %v2597_v41 }
 0x21e   : > { %v2640_v62 = vpop.f32.mrf.mxu1 }
 0x21f   : > { %v1186_v63 = vadd.f32 %v2640_v62, %v2608_v45 }
 0x220   : > { %v1180_v1 = vpop.f32.mrf.mxu1 }
 0x221   : > { %v1181_v2 = vadd.f32 %v1180_v1, %v987_v46  ;;  %v1267_v3 = vadd.f32 %v3230_v0, %v1186_v63 }
 0x222   : > { %v2643_v4 = vpop.f32.mrf.mxu1 }
 0x223   : > { %v1266_v5 = vadd.f32 %v3230_v0, %v1181_v2  ;;  %v1196_v6 = vadd.f32 %v2643_v4, %v2611_v47  ;;  %v1283_v10 = vmax.f32 %v1267_v3, 0.0  ;;  %v1508_v2 = vshrl.u32 %v548_v50, 7 }
 0x224   : > { %v1190_v7 = vpop.f32.mrf.mxu1  ;;  %v2935_v4 = vmov 1.0  }
 0x225   : > { %v1282_v8 = vmax.f32 %v1266_v5, 0.0  ;;  %v1191_v9 = vadd.f32 %v1190_v7, %v997_v48  ;;  %v1269_v11 = vadd.f32 %v3230_v0, %v1196_v6  ;;  %v1510_v3 = vadd.s32 16, %v1508_v2 }
 0x226   : > { %v2646_v12 = vpop.f32.mrf.mxu1  ;;  %v3281_v5 = vadd.s32 32, %v1508_v2  ;;  %v3283_v50 = vadd.s32 40, %v1508_v2  ;;  %v3289_v6 = vadd.s32 8, %v1508_v2  ;;  %v3292_v7 = vadd.s32 48, %v1508_v2 }
 0x227   : > { %v1268_v13 = vadd.f32 %v3230_v0, %v1191_v9  ;;  %v1206_v14 = vadd.f32 %v2646_v12, %v2614_v49  ;;  %2678 = vmatprep.mubr.msk.f32.mxu0 %vm654_vm2, %v1282_v8  ;;  %v1285_v18 = vmax.f32 %v1269_v11, 0.0  ;;  %v3297_v8 = vadd.s32 56, %v1508_v2 }
 0x228   : > { %v1200_v15 = vpop.f32.mrf.mxu1  ;;  %2679 = vmatmul.mubr.msk.f32.vlgmr.msra.gmra.mxu0 %vm654_vm2, %v1283_v10 }
 0x229   : > { %v1284_v16 = vmax.f32 %v1268_v13, 0.0  ;;  %v1201_v17 = vadd.f32 %v1200_v15, %v1007_v51  ;;  %v1271_v19 = vadd.f32 %v3230_v0, %v1206_v14 }
 0x22a   : > { %v2649_v20 = vpop.f32.mrf.mxu1 }
 0x22b   : > { %v1270_v21 = vadd.f32 %v3230_v0, %v1201_v17  ;;  %v1216_v22 = vadd.f32 %v2649_v20, %v2617_v52  ;;  %2681 = vmatprep.mubr.msk.f32.mxu0 %vm654_vm2, %v1284_v16  ;;  %v1287_v26 = vmax.f32 %v1271_v19, 0.0 }
 0x22c   : > { %v1210_v23 = vpop.f32.mrf.mxu1  ;;  %2682 = vmatmul.mubr.msk.f32.gmra.mxu0 %vm654_vm2, %v1285_v18 }
 0x22d   : > { %v1286_v24 = vmax.f32 %v1270_v21, 0.0  ;;  %v1211_v25 = vadd.f32 %v1210_v23, %v1017_v53  ;;  %v1273_v27 = vadd.f32 %v3230_v0, %v1216_v22  ;;  %v3316_v23 = vld [vmem:[%s3534_s9] ss:$0 sm:$0xff] }
 0x22e   : > { %v2652_v28 = vpop.f32.mrf.mxu1 }
 0x22f   : > { %v1272_v29 = vadd.f32 %v3230_v0, %v1211_v25  ;;  %v1226_v30 = vadd.f32 %v2652_v28, %v2620_v54  ;;  %2684 = vmatprep.mubr.msk.f32.mxu0 %vm654_vm2, %v1286_v24  ;;  %v1289_v34 = vmax.f32 %v1273_v27, 0.0 }
 0x230   : > { %v1220_v31 = vpop.f32.mrf.mxu1  ;;  %2685 = vmatmul.mubr.msk.f32.gmra.mxu0 %vm654_vm2, %v1287_v26 }
 0x231   : > { %v1288_v32 = vmax.f32 %v1272_v29, 0.0  ;;  %v1221_v33 = vadd.f32 %v1220_v31, %v1027_v55  ;;  %v1275_v35 = vadd.f32 %v3230_v0, %v1226_v30 }
 0x232   : > { %v2655_v36 = vpop.f32.mrf.mxu1 }
 0x233   : > { %v1274_v37 = vadd.f32 %v3230_v0, %v1221_v33  ;;  %v1236_v38 = vadd.f32 %v2655_v36, %v2623_v56  ;;  %2687 = vmatprep.mubr.msk.f32.mxu0 %vm654_vm2, %v1288_v32  ;;  %v1291_v42 = vmax.f32 %v1275_v35, 0.0 }
 0x234   : > { %v1230_v39 = vpop.f32.mrf.mxu1  ;;  %2688 = vmatmul.mubr.msk.f32.gmra.mxu0 %vm654_vm2, %v1289_v34 }
 0x235   : > { %v1290_v40 = vmax.f32 %v1274_v37, 0.0  ;;  %v1231_v41 = vadd.f32 %v1230_v39, %v1037_v57  ;;  %v1277_v43 = vadd.f32 %v3230_v0, %v1236_v38 }
 0x236   : > { %v2658_v44 = vpop.f32.mrf.mxu1 }
 0x237   : > { %v1276_v45 = vadd.f32 %v3230_v0, %v1231_v41  ;;  %v1246_v46 = vadd.f32 %v2658_v44, %v2626_v58  ;;  %2690 = vmatprep.mubr.msk.f32.mxu0 %vm654_vm2, %v1290_v40  ;;  %v1293_v51 = vmax.f32 %v1277_v43, 0.0  ;;  %v1545_v43 = vld [vmem:[#allocation2 + $0x8] sm:$0xff] }
 0x238   : > { %v1240_v47 = vpop.f32.mrf.mxu1  ;;  %2691 = vmatmul.mubr.msk.f32.gmra.mxu0 %vm654_vm2, %v1291_v42  ;;  %v1547_v42 = vld [vmem:[#allocation2 + $0x18] sm:$0xff] }
 0x239   : > { %v1292_v48 = vmax.f32 %v1276_v45, 0.0  ;;  %v1241_v49 = vadd.f32 %v1240_v47, %v3221_v59  ;;  %v1279_v52 = vadd.f32 %v3230_v0, %v1246_v46  ;;  %v1546_v45 = vld [vmem:[#allocation2 + $0x10] sm:$0xff]  ;;  %v1544_v47 = vld [vmem:[#allocation2] sm:$0xff] }
 0x23a   : > { %v2661_v53 = vpop.f32.mrf.mxu1 }
 0x23b   : > { %v1278_v54 = vadd.f32 %v3230_v0, %v1241_v49  ;;  %v1256_v55 = vadd.f32 %v2661_v53, %v3223_v60  ;;  %2693 = vmatprep.mubr.msk.f32.mxu0 %vm654_vm2, %v1292_v48  ;;  %v1295_v62 = vmax.f32 %v1279_v52, 0.0  ;;  %v1549_v52 = vld [vmem:[#allocation2 + $0x28] sm:$0xff] }
 0x23c   : > { %v1250_v56 = vpop.f32.mrf.mxu1  ;;  %2694 = vmatmul.mubr.msk.f32.gmra.mxu0 %vm654_vm2, %v1293_v51 }
 0x23d   : > { %v1294_v57 = vmax.f32 %v1278_v54, 0.0  ;;  %v1251_v58 = vadd.f32 %v1250_v56, %v3225_v61  ;;  %v1281_v59 = vadd.f32 %v3230_v0, %v1256_v55  ;;  %v3273_v61 = vld [vmem:[%s512_s24] ss:$0 sm:$0xff] }
 0x23e   : > { %vm1522_vm5 = vcmp.eq.s32.totalorder %v3273_v61, %v1510_v3  ;;  %vm1524_vm7 = vcmp.eq.s32.totalorder %v3273_v61, %v3281_v5  ;;  %vm1525_vm8 = vcmp.eq.s32.totalorder %v3273_v61, %v3283_v50  ;;  %vm1520_vm9 = vcmp.eq.s32.totalorder %v3273_v61, %v1508_v2 }
 0x23f   : > { %v1280_v63 = vadd.f32 %v3230_v0, %v1251_v58  ;;  %2696 = vmatprep.mubr.msk.f32.mxu0 %vm654_vm2, %v1294_v57  ;;  %v1297_v60 = vmax.f32 %v1281_v59, 0.0  ;;  %v3275_v0 = vadd.s32 24, %v1508_v2  ;;  %2737 = vmatprep.mubr.msk.f32.mxu1 %vm1522_vm5, %v2935_v4  ;;  %vm1521_vm10 = vcmp.eq.s32.totalorder %v3273_v61, %v3289_v6  ;;  %v1548_v57 = vld [vmem:[#allocation2 + $0x20] sm:$0xff]  ;;  %v1551_v59 = vld [vmem:[#allocation2 + $0x38] sm:$0xff] }
 0x240   : > { %2697 = vmatmul.mubr.msk.f32.gmra.mxu0 %vm654_vm2, %v1295_v62  ;;  %vm1526_vm11 = vcmp.eq.s32.totalorder %v3273_v61, %v3292_v7  ;;  %vm1527_vm12 = vcmp.eq.s32.totalorder %v3273_v61, %v3297_v8 }
 0x241   : > { %v1296_v1 = vmax.f32 %v1280_v63, 0.0  ;;  %vm1523_vm6 = vcmp.eq.s32.totalorder %v3273_v61, %v3275_v0 }
 0x243   : > { %2699 = vmatprep.mubr.msk.f32.mxu0 %vm654_vm2, %v1296_v1 }
 0x244   : > { %2700 = vmatmul.mubr.msk.f32.gmra.mxu0 %vm654_vm2, %v1297_v60  ;;  %v1550_v60 = vld [vmem:[#allocation2 + $0x30] sm:$0xff] }
 0x245   : > { %2734 = vmatprep.mubr.msk.f32.mxu0 %vm1520_vm9, %v2935_v4 }
 0x2e8   : > { %v3303_v9 = vpop.f32.mrf.mxu0 }
 0x2e9   : > { %v1433_v40 = vadd.f32 %v3303_v9, %v3316_v23 }
 0x2ea   : > { %v3305_v10 = vpop.f32.mrf.mxu0 }
 0x2eb   : > { %v1428_v41 = vadd.f32 %v3316_v23, %v3305_v10 }
 0x2ec   : > { %v3307_v11 = vpop.f32.mrf.mxu0 }
 0x2ed   : > { %v1443_v38 = vadd.f32 %v3307_v11, %v3316_v23 }
 0x2ee   : > { %v3309_v12 = vpop.f32.mrf.mxu0 }
 0x2ef   : > { %v1438_v39 = vadd.f32 %v3316_v23, %v3309_v12 }
 0x2f0   : > { %v2686_v13 = vpop.f32.mrf.mxu0 }
 0x2f1   : > { %v1453_v36 = vadd.f32 %v2686_v13, %v3316_v23 }
 0x2f2   : > { %v3311_v14 = vpop.f32.mrf.mxu0 }
 0x2f3   : > { %v1448_v37 = vadd.f32 %v3316_v23, %v3311_v14 }
 0x2f4   : > { %v2689_v15 = vpop.f32.mrf.mxu0 }
 0x2f5   : > { %v1463_v34 = vadd.f32 %v2689_v15, %v3316_v23 }
 0x2f6   : > { %v1457_v16 = vpop.f32.mrf.mxu0 }
 0x2f7   : > { %v1458_v35 = vadd.f32 %v3316_v23, %v1457_v16 }
 0x2f8   : > { %v2692_v17 = vpop.f32.mrf.mxu0 }
 0x2f9   : > { %v1473_v32 = vadd.f32 %v2692_v17, %v3316_v23 }
 0x2fa   : > { %v1467_v18 = vpop.f32.mrf.mxu0 }
 0x2fb   : > { %v1468_v33 = vadd.f32 %v3316_v23, %v1467_v18 }
 0x2fc   : > { %v2695_v19 = vpop.f32.mrf.mxu0 }
 0x2fd   : > { %v1483_v30 = vadd.f32 %v2695_v19, %v3316_v23 }
 0x2fe   : > { %v1477_v20 = vpop.f32.mrf.mxu0 }
 0x2ff   : > { %v1478_v31 = vadd.f32 %v3316_v23, %v1477_v20 }
 0x300   : > { %v2698_v21 = vpop.f32.mrf.mxu0 }
 0x301   : > { %v1493_v28 = vadd.f32 %v2698_v21, %v3316_v23 }
 0x302   : > { %v1487_v22 = vpop.f32.mrf.mxu0 }
 0x303   : > { %v1488_v29 = vadd.f32 %v3316_v23, %v1487_v22 }
 0x304   : > { %v2701_v24 = vpop.f32.mrf.mxu0 }
 0x305   : > { %v1503_v25 = vadd.f32 %v2701_v24, %v3316_v23 }
 0x306   : > { %v1497_v26 = vpop.f32.mrf.mxu0 }
 0x307   : > { %v1498_v27 = vadd.f32 %v3316_v23, %v1497_v26  ;;  %2702 = vmatprep.subr.mxu0 %v1503_v25  ;;  %2822 = vmatprep.subr.mxu1 %v1503_v25 }
 0x308   : > { %2703 = vmatpush3.msra.mxu0 %v1503_v25  ;;  %2838 = vmatpush3.msra.mxu1 %v1503_v25 }
 0x309   : > { %2704 = vmatprep.subr.mxu0 %v1498_v27  ;;  %2823 = vmatprep.subr.mxu1 %v1498_v27 }
 0x30a   : > { %2705 = vmatpush3.msra.mxu0 %v1498_v27  ;;  %2839 = vmatpush3.msra.mxu1 %v1498_v27 }
 0x30b   : > { %2706 = vmatprep.subr.mxu0 %v1493_v28  ;;  %2824 = vmatprep.subr.mxu1 %v1493_v28 }
 0x30c   : > { %2707 = vmatpush3.msra.mxu0 %v1493_v28  ;;  %2840 = vmatpush3.msra.mxu1 %v1493_v28 }
 0x30d   : > { %2708 = vmatprep.subr.mxu0 %v1488_v29  ;;  %2825 = vmatprep.subr.mxu1 %v1488_v29 }
 0x30e   : > { %2709 = vmatpush3.msra.mxu0 %v1488_v29  ;;  %2841 = vmatpush3.msra.mxu1 %v1488_v29 }
 0x30f   : > { %2710 = vmatprep.subr.mxu0 %v1483_v30  ;;  %2826 = vmatprep.subr.mxu1 %v1483_v30 }
 0x310   : > { %2711 = vmatpush3.msra.mxu0 %v1483_v30  ;;  %2842 = vmatpush3.msra.mxu1 %v1483_v30 }
 0x311   : > { %2712 = vmatprep.subr.mxu0 %v1478_v31  ;;  %2827 = vmatprep.subr.mxu1 %v1478_v31 }
 0x312   : > { %2713 = vmatpush3.msra.mxu0 %v1478_v31  ;;  %2843 = vmatpush3.msra.mxu1 %v1478_v31 }
 0x313   : > { %2714 = vmatprep.subr.mxu0 %v1473_v32  ;;  %2828 = vmatprep.subr.mxu1 %v1473_v32 }
 0x314   : > { %2715 = vmatpush3.msra.mxu0 %v1473_v32  ;;  %2844 = vmatpush3.msra.mxu1 %v1473_v32 }
 0x315   : > { %2716 = vmatprep.subr.mxu0 %v1468_v33  ;;  %2829 = vmatprep.subr.mxu1 %v1468_v33 }
 0x316   : > { %2717 = vmatpush3.msra.mxu0 %v1468_v33  ;;  %2845 = vmatpush3.msra.mxu1 %v1468_v33 }
 0x317   : > { %2718 = vmatprep.subr.mxu0 %v1463_v34  ;;  %2830 = vmatprep.subr.mxu1 %v1463_v34 }
 0x318   : > { %2719 = vmatpush3.msra.mxu0 %v1463_v34  ;;  %2846 = vmatpush3.msra.mxu1 %v1463_v34 }
 0x319   : > { %2720 = vmatprep.subr.mxu0 %v1458_v35  ;;  %2831 = vmatprep.subr.mxu1 %v1458_v35 }
 0x31a   : > { %2721 = vmatpush3.msra.mxu0 %v1458_v35  ;;  %2847 = vmatpush3.msra.mxu1 %v1458_v35 }
 0x31b   : > { %2722 = vmatprep.subr.mxu0 %v1453_v36  ;;  %2832 = vmatprep.subr.mxu1 %v1453_v36 }
 0x31c   : > { %2723 = vmatpush3.msra.mxu0 %v1453_v36  ;;  %2848 = vmatpush3.msra.mxu1 %v1453_v36 }
 0x31d   : > { %2724 = vmatprep.subr.mxu0 %v1448_v37  ;;  %2833 = vmatprep.subr.mxu1 %v1448_v37 }
 0x31e   : > { %2725 = vmatpush3.msra.mxu0 %v1448_v37  ;;  %2849 = vmatpush3.msra.mxu1 %v1448_v37 }
 0x31f   : > { %2726 = vmatprep.subr.mxu0 %v1443_v38  ;;  %2834 = vmatprep.subr.mxu1 %v1443_v38 }
 0x320   : > { %2727 = vmatpush3.msra.mxu0 %v1443_v38  ;;  %2850 = vmatpush3.msra.mxu1 %v1443_v38 }
 0x321   : > { %2728 = vmatprep.subr.mxu0 %v1438_v39  ;;  %2835 = vmatprep.subr.mxu1 %v1438_v39 }
 0x322   : > { %2729 = vmatpush3.msra.mxu0 %v1438_v39  ;;  %2851 = vmatpush3.msra.mxu1 %v1438_v39 }
 0x323   : > { %2730 = vmatprep.subr.mxu0 %v1433_v40  ;;  %2836 = vmatprep.subr.mxu1 %v1433_v40 }
 0x324   : > { %2731 = vmatpush3.msra.mxu0 %v1433_v40  ;;  %2852 = vmatpush3.msra.mxu1 %v1433_v40 }
 0x325   : > { %2732 = vmatprep.subr.mxu0 %v1428_v41  ;;  %2837 = vmatprep.subr.mxu1 %v1428_v41 }
 0x326   : > { %2733 = vmatpush3.msra.mxu0 %v1428_v41  ;;  %2853 = vmatpush3.msra.mxu1 %v1428_v41 }
 0x327   : > { %2738 = vmatmul.mubr.msk.f32.vlgmr.msra.gmra.mxu1 %vm1523_vm6, %v2935_v4  ;;  %2735 = vmatmul.mubr.msk.f32.vlgmr.msra.gmra.mxu0 %vm1521_vm10, %v2935_v4 }
 0x328   : > { %2740 = vmatprep.mubr.msk.f32.mxu1 %vm1524_vm7, %v2935_v4 }
 0x32b   : > { %2741 = vmatmul.mubr.msk.f32.gmra.mxu1 %vm1525_vm8, %v2935_v4 }
 0x32c   : > { %2743 = vmatprep.mubr.msk.f32.mxu1 %vm1526_vm11, %v2935_v4 }
 0x32f   : > { %2744 = vmatmul.mubr.msk.f32.gmra.mxu1 %vm1527_vm12, %v2935_v4 }
 0x3e7   : > { %v2739_v44 = vpop.f32.mrf.mxu1  ;;  %v2736_v46 = vpop.f32.mrf.mxu0 }
 0x3e8   : > { %v1660_v48 = vadd.f32 %v2739_v44, %v1547_v42  ;;  %v1658_v49 = vadd.f32 %v2736_v46, %v1545_v43 }
 0x3e9   : > { %v1628_v51 = vpop.f32.mrf.mxu1  ;;  %v1618_v53 = vpop.f32.mrf.mxu0 }
 0x3ea   : > { %1668 = vst.msk [vmem:[#allocation2 + $0x18] sm:$0xff] %vm654_vm2, %v1660_v48  ;;  %v1659_v54 = vadd.f32 %v1628_v51, %v1546_v45  ;;  %1666 = vst.msk [vmem:[#allocation2 + $0x8] sm:$0xff] %vm654_vm2, %v1658_v49  ;;  %v1657_v55 = vadd.f32 %v1618_v53, %v1544_v47 }
 0x3eb   : > { %v2742_v56 = vpop.f32.mrf.mxu1 }
 0x3ec   : > { %1667 = vst.msk [vmem:[#allocation2 + $0x10] sm:$0xff] %vm654_vm2, %v1659_v54  ;;  %v1662_v58 = vadd.f32 %v2742_v56, %v1549_v52  ;;  %1665 = vst.msk [vmem:[#allocation2] sm:$0xff] %vm654_vm2, %v1657_v55 }
 0x3ed   : > { %v1638_v62 = vpop.f32.mrf.mxu1 }
 0x3ee   : > { %1670 = vst.msk [vmem:[#allocation2 + $0x28] sm:$0xff] %vm654_vm2, %v1662_v58  ;;  %v1661_v63 = vadd.f32 %v1638_v62, %v1548_v57 }
 0x3ef   : > { %v2745_v1 = vpop.f32.mrf.mxu1 }
 0x3f0   : > { %1669 = vst.msk [vmem:[#allocation2 + $0x20] sm:$0xff] %vm654_vm2, %v1661_v63  ;;  %v1664_v2 = vadd.f32 %v2745_v1, %v1551_v59  ;;  %1676 = sbr.rel (%p2371_p6) target bundleno = 1557 (0x615), region = 88 }
 0x3f1   : > { %v1648_v3 = vpop.f32.mrf.mxu1 }
 0x3f2   : > { %1672 = vst.msk [vmem:[#allocation2 + $0x38] sm:$0xff] %vm654_vm2, %v1664_v2  ;;  %v1663_v61 = vadd.f32 %v1648_v3, %v1550_v60 }
 0x3f4   : > { %1671 = vst.msk [vmem:[#allocation2 + $0x30] sm:$0xff] %vm654_vm2, %v1663_v61 }
 0x3f5   : > { %v1687_v0 = vld [vmem:[%s3529_s4 + $0x10] sm:$0xff]  ;;  %v1685_v4 = vld [vmem:[%s3529_s4] sm:$0xff]  ;;  %v2936_v5 = vmov 0   ;;  %v1760_v50 = vld [vmem:[%s3536_s11 + $0x38] sm:$0xff] }
 0x3f6   : > { %2895 = vset.pattern.permute.xlu1 %v2936_v5  ;;  %2894 = vset.pattern.permute.xlu0 %v2936_v5  ;;  %v1688_v6 = vld [vmem:[%s3529_s4 + $0x18] sm:$0xff]  ;;  %v1686_v7 = vld [vmem:[%s3529_s4 + $0x8] sm:$0xff]  ;;  %v1759_v8 = vld [vmem:[%s3536_s11 + $0x30] sm:$0xff] }
 0x3f7   : > { %1705 = vperm.xlu1 %2895, %v1687_v0   ;;  %1695 = vperm.xlu0 %2894, %v1685_v4   ;;  %v1752_v9 = vld [vmem:[%s3535_s10 + $0x18] sm:$0xff]  ;;  %v1758_v10 = vld [vmem:[%s3536_s11 + $0x28] sm:$0xff]  ;;  %v1751_v11 = vld [vmem:[%s3535_s10 + $0x10] sm:$0xff] }
 0x3f8   : > { %2746 = vmatprep.subr.mxu0 %v1760_v50  ;;  %2774 = vmatprep.subr.mxu1 %v1752_v9  ;;  %v1690_v12 = vld [vmem:[%s3529_s4 + $0x28] sm:$0xff]  ;;  %v1689_v13 = vld [vmem:[%s3529_s4 + $0x20] sm:$0xff]  ;;  %v1756_v16 = vld [vmem:[%s3536_s11 + $0x18] sm:$0xff] }
 0x3f9   : > { %2747 = vmatpush3.msra.mxu0 %v1760_v50  ;;  %2775 = vmatpush3.msra.mxu1 %v1752_v9  ;;  %v1757_v14 = vld [vmem:[%s3536_s11 + $0x20] sm:$0xff]  ;;  %v1750_v15 = vld [vmem:[%s3535_s10 + $0x8] sm:$0xff]  ;;  %v1692_v18 = vld [vmem:[%s3529_s4 + $0x38] sm:$0xff] }
 0x3fa   : > { %2748 = vmatprep.subr.mxu0 %v1759_v8  ;;  %2776 = vmatprep.subr.mxu1 %v1751_v11  ;;  %v1749_v17 = vld [vmem:[%s3535_s10] sm:$0xff]  ;;  %v1691_v19 = vld [vmem:[%s3529_s4 + $0x30] sm:$0xff]  ;;  %v1742_v22 = vld [vmem:[%s3528_s3 + $0x8] sm:$0xff] }
 0x3fb   : > { %1710 = vperm.xlu1 %2895, %v1688_v6   ;;  %1700 = vperm.xlu0 %2894, %v1686_v7   ;;  %v1755_v20 = vld [vmem:[%s3536_s11 + $0x10] sm:$0xff]  ;;  %v1741_v21 = vld [vmem:[%s3528_s3] sm:$0xff]  ;;  %v1754_v23 = vld [vmem:[%s3536_s11 + $0x8] sm:$0xff] }
 0x3fc   : > { %2749 = vmatpush3.msra.mxu0 %v1759_v8  ;;  %2777 = vmatpush3.msra.mxu1 %v1751_v11  ;;  %v1743_v24 = vld [vmem:[%s3528_s3 + $0x10] sm:$0xff]  ;;  %v1753_v25 = vld [vmem:[%s3536_s11] sm:$0xff]  ;;  %v1744_v26 = vld [vmem:[%s3528_s3 + $0x18] sm:$0xff] }
 0x3fd   : > { %2750 = vmatprep.subr.mxu0 %v1758_v10  ;;  %2778 = vmatprep.subr.mxu1 %v1750_v15  ;;  %v2049_v27 = vld [vmem:[%s3538_s13 + $0x38] sm:$0xff]  ;;  %v1745_v28 = vld [vmem:[%s3528_s3 + $0x20] sm:$0xff]  ;;  %v1746_v29 = vld [vmem:[%s3528_s3 + $0x28] sm:$0xff] }
 0x3fe   : > { %2751 = vmatpush3.msra.mxu0 %v1758_v10  ;;  %2779 = vmatpush3.msra.mxu1 %v1750_v15  ;;  %v2048_v30 = vld [vmem:[%s3538_s13 + $0x30] sm:$0xff]  ;;  %v1748_v32 = vld [vmem:[%s3528_s3 + $0x38] sm:$0xff]  ;;  %v2047_v33 = vld [vmem:[%s3538_s13 + $0x28] sm:$0xff] }
 0x3ff   : > { %1720 = vperm.xlu1 %2895, %v1690_v12   ;;  %1715 = vperm.xlu0 %2894, %v1689_v13   ;;  %v1747_v31 = vld [vmem:[%s3528_s3 + $0x30] sm:$0xff]  ;;  %v1677_v34 = vld [vmem:[#allocation2] sm:$0xff]  ;;  %v1678_v39 = vld [vmem:[#allocation2 + $0x8] sm:$0xff] }
 0x400   : > { %2752 = vmatprep.subr.mxu0 %v1757_v14  ;;  %2780 = vmatprep.subr.mxu1 %v1749_v17  ;;  %v1679_v37 = vld [vmem:[#allocation2 + $0x10] sm:$0xff]  ;;  %v1680_v44 = vld [vmem:[#allocation2 + $0x18] sm:$0xff]  ;;  %v1681_v45 = vld [vmem:[#allocation2 + $0x20] sm:$0xff] }
 0x401   : > { %2753 = vmatpush3.msra.mxu0 %v1757_v14  ;;  %2781 = vmatpush3.msra.mxu1 %v1749_v17  ;;  %v1682_v51 = vld [vmem:[#allocation2 + $0x28] sm:$0xff]  ;;  %v1683_v52 = vld [vmem:[#allocation2 + $0x30] sm:$0xff]  ;;  %v1684_v57 = vld [vmem:[#allocation2 + $0x38] sm:$0xff] }
 0x402   : > { %2754 = vmatprep.subr.mxu0 %v1756_v16  ;;  %2782 = vmatprep.mubr.msk.f32.mxu1 %vm872_vm1, %v1741_v21  ;;  %v2046_v62 = vld [vmem:[%s3538_s13 + $0x20] sm:$0xff]  ;;  %v2045_v59 = vld [vmem:[%s3538_s13 + $0x18] sm:$0xff]  ;;  %v2044_v63 = vld [vmem:[%s3538_s13 + $0x10] sm:$0xff] }
 0x403   : > { %1730 = vperm.xlu1 %2895, %v1692_v18   ;;  %1725 = vperm.xlu0 %2894, %v1691_v19   ;;  %v2043_v1 = vld [vmem:[%s3538_s13 + $0x8] sm:$0xff]  ;;  %v2042_v60 = vld [vmem:[%s3538_s13] sm:$0xff] }
 0x404   : > { %2755 = vmatpush3.msra.mxu0 %v1756_v16  ;;  %2783 = vmatmul.mubr.msk.f32.vlgmr.msra.gmra.mxu1 %vm872_vm1, %v1742_v22  ;;  %v2388_v50 = vld [vmem:[%s3537_s12] ss:$0 sm:$0xff] }
 0x405   : > { %2756 = vmatprep.subr.mxu0 %v1755_v20  ;;  %2785 = vmatprep.mubr.msk.f32.mxu1 %vm872_vm1, %v1743_v24 }
 0x406   : > { %2757 = vmatpush3.msra.mxu0 %v1755_v20  ;;  %2854 = vmatprep.subr.mxu1 %v2049_v27 }
 0x407   : > { %2758 = vmatprep.subr.mxu0 %v1754_v23  ;;  %2862 = vmatpush3.msra.mxu1 %v2049_v27 }
 0x408   : > { %2759 = vmatpush3.msra.mxu0 %v1754_v23  ;;  %2786 = vmatmul.mubr.msk.f32.gmra.mxu1 %vm872_vm1, %v1744_v26 }
 0x409   : > { %2760 = vmatprep.subr.mxu0 %v1753_v25  ;;  %2788 = vmatprep.mubr.msk.f32.mxu1 %vm872_vm1, %v1745_v28 }
 0x40a   : > { %2761 = vmatpush3.msra.mxu0 %v1753_v25  ;;  %2855 = vmatprep.subr.mxu1 %v2048_v30 }
 0x40b   : > { %2794 = vmatprep.subr.mxu0 %v2049_v27  ;;  %2863 = vmatpush3.msra.mxu1 %v2048_v30 }
 0x40c   : > { %2789 = vmatmul.mubr.msk.f32.gmra.mxu1 %vm872_vm1, %v1746_v29  ;;  %2856 = vmatprep.subr.mxu1 %v2047_v33 }
 0x40d   : > { %2791 = vmatprep.mubr.msk.f32.mxu1 %vm872_vm1, %v1747_v31  ;;  %2864 = vmatpush3.msra.mxu1 %v2047_v33 }
 0x40e   : > { %2857 = vmatprep.subr.mxu1 %v2046_v62 }
 0x40f   : > { %2865 = vmatpush3.msra.mxu1 %v2046_v62 }
 0x410   : > { %2792 = vmatmul.mubr.msk.f32.gmra.mxu1 %vm872_vm1, %v1748_v32  ;;  %2858 = vmatprep.subr.mxu1 %v2045_v59 }
 0x411   : > { %2866 = vmatpush3.msra.mxu1 %v2045_v59 }
 0x412   : > { %2859 = vmatprep.subr.mxu1 %v2044_v63 }
 0x413   : > { %2867 = vmatpush3.msra.mxu1 %v2044_v63 }
 0x414   : > { %2860 = vmatprep.subr.mxu1 %v2043_v1 }
 0x415   : > { %2868 = vmatpush3.msra.mxu1 %v2043_v1 }
 0x416   : > { %2861 = vmatprep.subr.mxu1 %v2042_v60 }
 0x417   : > { %2869 = vmatpush3.msra.mxu1 %v2042_v60 }
 0x472   : > { %v1706_v35 = vpop.permute.xlu1 %1705  ;;  %v1696_v36 = vpop.permute.xlu0 %1695 }
 0x473   : > { %v1733_v38 = vmul.f32 %v1696_v36, %v1677_v34  ;;  %v1735_v40 = vmul.f32 %v1706_v35, %v1679_v37 }
 0x475   : > { %2762 = vmatprep.mubr.msk.f32.mxu0 %vm654_vm2, %v1733_v38 }
 0x476   : > { %v1711_v41 = vpop.permute.xlu1 %1710  ;;  %v1701_v42 = vpop.permute.xlu0 %1700 }
 0x477   : > { %v1734_v43 = vmul.f32 %v1701_v42, %v1678_v39  ;;  %v1736_v48 = vmul.f32 %v1711_v41, %v1680_v44 }
 0x479   : > { %2763 = vmatmul.mubr.msk.f32.vlgmr.msra.gmra.mxu0 %vm654_vm2, %v1734_v43 }
 0x47a   : > { %v1721_v46 = vpop.permute.xlu1 %1720  ;;  %v1716_v47 = vpop.permute.xlu0 %1715  ;;  %2765 = vmatprep.mubr.msk.f32.mxu0 %vm654_vm2, %v1735_v40  ;;  %2795 = vmatpush3.msra.mxu0 %v2049_v27  ;;  %v2389_v40 = vld [vmem:[%s3539_s14] ss:$0 sm:$0xff] }
 0x47b   : > { %v1737_v49 = vmul.f32 %v1716_v47, %v1681_v45  ;;  %2796 = vmatprep.subr.mxu0 %v2048_v30  ;;  %v1738_v54 = vmul.f32 %v1721_v46, %v1682_v51 }
 0x47c   : > { %2797 = vmatpush3.msra.mxu0 %v2048_v30 }
 0x47d   : > { %2766 = vmatmul.mubr.msk.f32.gmra.mxu0 %vm654_vm2, %v1736_v48  ;;  %2798 = vmatprep.subr.mxu0 %v2047_v33 }
 0x47e   : > { %v1726_v53 = vpop.permute.xlu0 %1725  ;;  %2768 = vmatprep.mubr.msk.f32.mxu0 %vm654_vm2, %v1737_v49  ;;  %2799 = vmatpush3.msra.mxu0 %v2047_v33  ;;  %v1731_v56 = vpop.permute.xlu1 %1730 }
 0x47f   : > { %v1739_v55 = vmul.f32 %v1726_v53, %v1683_v52  ;;  %v1740_v58 = vmul.f32 %v1731_v56, %v1684_v57  ;;  %2800 = vmatprep.subr.mxu0 %v2046_v62 }
 0x480   : > { %2801 = vmatpush3.msra.mxu0 %v2046_v62 }
 0x481   : > { %2769 = vmatmul.mubr.msk.f32.gmra.mxu0 %vm654_vm2, %v1738_v54  ;;  %2802 = vmatprep.subr.mxu0 %v2045_v59 }
 0x482   : > { %2771 = vmatprep.mubr.msk.f32.mxu0 %vm654_vm2, %v1739_v55  ;;  %2803 = vmatpush3.msra.mxu0 %v2045_v59 }
 0x483   : > { %2804 = vmatprep.subr.mxu0 %v2044_v63 }
 0x484   : > { %2805 = vmatpush3.msra.mxu0 %v2044_v63 }
 0x485   : > { %2772 = vmatmul.mubr.msk.f32.gmra.mxu0 %vm654_vm2, %v1740_v58  ;;  %2806 = vmatprep.subr.mxu0 %v2043_v1 }
 0x486   : > { %2807 = vmatpush3.msra.mxu0 %v2043_v1 }
 0x487   : > { %2808 = vmatprep.subr.mxu0 %v2042_v60 }
 0x488   : > { %2809 = vmatpush3.msra.mxu0 %v2042_v60 }
 0x4c4   : > { %v2784_v2 = vpop.f32.mrf.mxu1 }
 0x4c6   : > { %v1980_v3 = vpop.f32.mrf.mxu1 }
 0x4c8   : > { %v2787_v61 = vpop.f32.mrf.mxu1 }
 0x4ca   : > { %v1990_v0 = vpop.f32.mrf.mxu1 }
 0x4cc   : > { %v2790_v7 = vpop.f32.mrf.mxu1 }
 0x4ce   : > { %v2000_v14 = vpop.f32.mrf.mxu1 }
 0x4d0   : > { %v2793_v23 = vpop.f32.mrf.mxu1 }
 0x4d2   : > { %v2010_v31 = vpop.f32.mrf.mxu1 }
 0x539   : > { %v2764_v4 = vpop.f32.mrf.mxu0 }
 0x53a   : > { %v1986_v5 = vadd.f32 %v2784_v2, %v2764_v4 }
 0x53b   : > { %v1851_v6 = vpop.f32.mrf.mxu0 }
 0x53c   : > { %v1981_v8 = vadd.f32 %v1980_v3, %v1851_v6  ;;  %v2027_v9 = vadd.f32 %v2388_v50, %v1986_v5 }
 0x53d   : > { %v2767_v10 = vpop.f32.mrf.mxu0 }
 0x53e   : > { %v2026_v11 = vadd.f32 %v2388_v50, %v1981_v8  ;;  %v1996_v12 = vadd.f32 %v2787_v61, %v2767_v10  ;;  %v2035_v17 = vmax.f32 %v2027_v9, 0.0 }
 0x53f   : > { %v1861_v13 = vpop.f32.mrf.mxu0 }
 0x540   : > { %v2034_v15 = vmax.f32 %v2026_v11, 0.0  ;;  %v1991_v16 = vadd.f32 %v1990_v0, %v1861_v13  ;;  %v2029_v18 = vadd.f32 %v2388_v50, %v1996_v12 }
 0x541   : > { %v2770_v19 = vpop.f32.mrf.mxu0 }
 0x542   : > { %v2028_v20 = vadd.f32 %v2388_v50, %v1991_v16  ;;  %v2006_v21 = vadd.f32 %v2790_v7, %v2770_v19  ;;  %2810 = vmatprep.mubr.msk.f32.mxu0 %vm654_vm2, %v2034_v15  ;;  %v2037_v26 = vmax.f32 %v2029_v18, 0.0 }
 0x543   : > { %v1871_v22 = vpop.f32.mrf.mxu0  ;;  %2811 = vmatmul.mubr.msk.f32.vlgmr.msra.gmra.mxu0 %vm654_vm2, %v2035_v17 }
 0x544   : > { %v2036_v24 = vmax.f32 %v2028_v20, 0.0  ;;  %v2001_v25 = vadd.f32 %v2000_v14, %v1871_v22  ;;  %v2031_v27 = vadd.f32 %v2388_v50, %v2006_v21 }
 0x545   : > { %v2773_v28 = vpop.f32.mrf.mxu0 }
 0x546   : > { %v2030_v29 = vadd.f32 %v2388_v50, %v2001_v25  ;;  %v2016_v30 = vadd.f32 %v2793_v23, %v2773_v28  ;;  %2813 = vmatprep.mubr.msk.f32.mxu1 %vm654_vm2, %v2036_v24  ;;  %v2039_v35 = vmax.f32 %v2031_v27, 0.0 }
 0x547   : > { %v1881_v32 = vpop.f32.mrf.mxu0  ;;  %2814 = vmatmul.mubr.msk.f32.vlgmr.msra.gmra.mxu1 %vm654_vm2, %v2037_v26 }
 0x548   : > { %v2038_v33 = vmax.f32 %v2030_v29, 0.0  ;;  %v2011_v34 = vadd.f32 %v2010_v31, %v1881_v32  ;;  %v2033_v36 = vadd.f32 %v2388_v50, %v2016_v30 }
 0x54a   : > { %v2032_v37 = vadd.f32 %v2388_v50, %v2011_v34  ;;  %2816 = vmatprep.mubr.msk.f32.mxu1 %vm654_vm2, %v2038_v33  ;;  %v2041_v39 = vmax.f32 %v2033_v36, 0.0 }
 0x54b   : > { %2817 = vmatmul.mubr.msk.f32.gmra.mxu1 %vm654_vm2, %v2039_v35 }
 0x54c   : > { %v2040_v38 = vmax.f32 %v2032_v37, 0.0 }
 0x54e   : > { %2819 = vmatprep.mubr.msk.f32.mxu1 %vm654_vm2, %v2040_v38 }
 0x54f   : > { %2820 = vmatmul.mubr.msk.f32.gmra.mxu1 %vm654_vm2, %v2041_v39 }
 0x603   : > { %v2812_v41 = vpop.f32.mrf.mxu0 }
 0x604   : > { %v2153_v42 = vadd.f32 %v2812_v41, %v2389_v40 }
 0x605   : > { %v2147_v43 = vpop.f32.mrf.mxu0 }
 0x606   : > { %2187 = vst [vmem:[#allocation3 + $0x8] sm:$0xff] %v2153_v42  ;;  %v2148_v44 = vadd.f32 %v2389_v40, %v2147_v43 }
 0x607   : > { %v2815_v45 = vpop.f32.mrf.mxu1 }
 0x608   : > { %2186 = vst [vmem:[#allocation3] sm:$0xff] %v2148_v44  ;;  %v2163_v46 = vadd.f32 %v2815_v45, %v2389_v40 }
 0x609   : > { %v2157_v47 = vpop.f32.mrf.mxu1 }
 0x60a   : > { %2189 = vst [vmem:[#allocation3 + $0x18] sm:$0xff] %v2163_v46  ;;  %v2158_v48 = vadd.f32 %v2389_v40, %v2157_v47 }
 0x60b   : > { %v2818_v49 = vpop.f32.mrf.mxu1 }
 0x60c   : > { %2188 = vst [vmem:[#allocation3 + $0x10] sm:$0xff] %v2158_v48  ;;  %v2173_v51 = vadd.f32 %v2818_v49, %v2389_v40 }
 0x60d   : > { %v2167_v52 = vpop.f32.mrf.mxu1 }
 0x60e   : > { %2191 = vst [vmem:[#allocation3 + $0x28] sm:$0xff] %v2173_v51  ;;  %v2168_v53 = vadd.f32 %v2389_v40, %v2167_v52 }
 0x60f   : > { %v2821_v54 = vpop.f32.mrf.mxu1 }
 0x610   : > { %2190 = vst [vmem:[#allocation3 + $0x20] sm:$0xff] %v2168_v53  ;;  %v2183_v55 = vadd.f32 %v2821_v54, %v2389_v40 }
 0x611   : > { %v2177_v56 = vpop.f32.mrf.mxu1 }
 0x612   : > { %2193 = vst [vmem:[#allocation3 + $0x38] sm:$0xff] %v2183_v55  ;;  %v2178_v57 = vadd.f32 %v2389_v40, %v2177_v56 }
 0x614   : > { %2192 = vst [vmem:[#allocation3 + $0x30] sm:$0xff] %v2178_v57 }
 0x615 PF: > { %p2874_p7 = scmp.eq.s32.totalorder %s3026_s19, 2  ;;  %s2937_s21 = smov [#allocation3]  }
 0x616   : > { %s2200_s24 = sshll.u32 %s2937_s21, 4  ;;  %s2201_s24 = int_to_ptr.vmem [resolvable:$true] %s2200_s24 }
 0x617   : > { %s2896_s22 = scalar_lea.vmem %s2201_s24, 1024  ;;  %p2903_p11 = scmp.lt.s32.totalorder %s2201_s24, %s2201_s24 }
 0x618   : > { %p2897_p8 = scmp.ne.s32.totalorder %s2201_s24, %s2896_s22  ;;  %p2904_p12 = scmp.lt.s32.totalorder %s2896_s22, %s2896_s22 }
 0x61a   : > { %p2898_p9 = pnand %p2897_p8, %p2874_p7  ;;  %p2905_p13 = por %p2904_p12, %p2903_p11 }
 0x61c   : > { %p2899_p10 = pneg %p2898_p9 }
 0x61e   : > { %p2906_p0 = pnand %p2905_p13, %p2899_p10 }
 0x620   : > { %2909 = shalt.err (!%p2906_p0)
}
 0x621   : > { %s2938_s23 = smov 128   ;;  %s2939_s16 = smov 8  }
 0x622   : > { %2871 = dma.vmem_to_hbm [thread:$0]  (%p2874_p7), %s2201_s24, 1024, %s3540_s15, [#allocation4], %s2938_s23, %s2938_s23, %s2939_s16  }
 0x623   : > { %2925 = dma.done.wait (%p2874_p7), [#allocation4], 1024  }
 0x624   : > { %2927 = vsyncadd (%p2874_p7), [#allocation4], 4294966272 }
 0x625 PF: > { %s26_s18 = sadd.s32 1, %s2930_s18  }
 0x626   : > { %p23_p1 = scmp.ge.s32.totalorder %s26_s18, 5  }
 0x628   :  { %25 = sbr.rel (!%p23_p1) target bundleno = 1 (0x1), region = 121 }
 0x62d   :  { %2216 = vsyncpa [#allocation4], 1 }
 0x62e   :  { %2218 = vsyncpa [#allocation4 + $0x1], 1 }

</bundles_post_ra>
